<compile_context>
chip_gen: v6e
topology: v6e:2x2x1
jax: 0.10.0
libtpu: 0.0.40
codegen_flags: <defaults>
</compile_context>

<pallas_src>
import jax
import jax.numpy as jnp
from jax.experimental import pallas as pl
from jax.experimental.pallas import tpu as pltpu


def _round_up(n, m):
    return ((n + m - 1) // m) * m


def _vmem_limit(est_bytes):
    # 2x margin over the residency estimate; floor 32 MiB (>= every generation's
    # scoped default for the shapes we run), cap 64 MiB (v7x physical per core).
    return int(min(max(2 * est_bytes + (2 << 20), 32 << 20), 64 << 20))


# ----------------------------------------------------------------------------
# Pallas kernel 1: fused 3x3 conv (stride 1, pad 1), row-band tiled output
# ----------------------------------------------------------------------------
def conv3x3_pallas(x_nhwc, w9_pad, bias_pad):
    """Fused 3x3/stride-1/pad-1 conv (NHWC). bf16 MXU taps, f32 accumulation.

    x_nhwc:   (B, H, W, Cin)  float32
    w9_pad:   (9, Cin, Np)    bfloat16, tap-major (k = i*3 + j), Np multiple of 128
    bias_pad: (Np,)           float32
    returns   (B, H, W, Np)   float32
    """
    B, H, W, Cin = x_nhwc.shape
    Np = w9_pad.shape[-1]
    assert Np % 128 == 0
    Wp = W + 2                      # padded width
    Mo = H * Wp                     # flat output rows per batch (cols x >= W discarded)

    # Output row-band size: per-band accumulator (TB, Np) stays small.
    if Mo >= 512:
        TB = 256
    elif Mo >= 256:
        TB = 128
    else:
        TB = _round_up(Mo, 8)
    nb = pl.cdiv(Mo, TB)

    # Flattened padded-plane rows: enough for every tap of every band, including the
    # ragged last band's overhang (slack rows are zeros; the rows they produce fall
    # in the partial output block's clipped region and are never written back).
    Mp = _round_up(max((H + 2) * Wp, nb * TB + 2 * Wp + 2), 8)

    # One spatial pad (no 9x im2col matrix in HBM); zero slack rows appended flat.
    xp = jnp.pad(x_nhwc, ((0, 0), (1, 1), (1, 1), (0, 0)))          # (B, H+2, Wp, Cin)
    xflat = xp.reshape(B, (H + 2) * Wp, Cin)
    if Mp > (H + 2) * Wp:
        xflat = jnp.pad(xflat, ((0, 0), (0, Mp - (H + 2) * Wp), (0, 0)))
    bias2d = bias_pad.reshape(1, Np).astype(jnp.float32)

    def kernel(x_ref, w_ref, b_ref, o_ref):
        # x_ref: (Mp, Cin) f32 resident plane | w_ref: (9, Cin, Np) bf16
        # b_ref: (1, Np) f32                  | o_ref: (TB, Np) f32 (one row band)
        start = pl.multiple_of(pl.program_id(1) * TB, 8)
        acc = jnp.zeros((TB, Np), jnp.float32)
        for i in range(3):
            for j in range(3):
                # Tap (i, j) of output flat row m lives at plane row m + i*Wp + j.
                tap = x_ref[pl.ds(start + i * Wp + j, TB), :].astype(jnp.bfloat16)
                acc += jnp.dot(tap, w_ref[i * 3 + j],
                               preferred_element_type=jnp.float32)
        o_ref[...] = acc + b_ref[...]

    est = (2 * Mp * Cin * 4              # resident plane (double-buffered across batch)
           + 9 * Cin * Np * 2 + Np * 4   # weights + bias
           + 2 * TB * Np * 4             # output band (double-buffered)
           + 4 * TB * max(Cin, Np) * 4)  # tap-slice copies + accumulator slack
    out = pl.pallas_call(
        kernel,
        out_shape=jax.ShapeDtypeStruct((B, Mo, Np), jnp.float32),
        grid=(B, nb),
        in_specs=[
            pl.BlockSpec((None, Mp, Cin), lambda b, r: (b, 0, 0)),  # plane resident across bands
            pl.BlockSpec((9, Cin, Np), lambda b, r: (0, 0, 0)),
            pl.BlockSpec((1, Np), lambda b, r: (0, 0)),
        ],
        out_specs=pl.BlockSpec((None, TB, Np), lambda b, r: (b, r, 0)),
        compiler_params=pltpu.CompilerParams(
            dimension_semantics=("parallel", "parallel"),
            vmem_limit_bytes=_vmem_limit(est)),
    )(xflat, w9_pad, bias2d)
    # (B, H, Wp, Np) -> drop the wrap-around columns x >= W.
    return out.reshape(B, H, Wp, Np)[:, :, :W, :]


# ----------------------------------------------------------------------------
# Pallas kernel 2: tiled matmul, bf16 operands, f32 accumulation, no bias
# ----------------------------------------------------------------------------
def _matmul_kernel(a_ref, b_ref, o_ref):
    o_ref[...] = jnp.dot(a_ref[...], b_ref[...], preferred_element_type=jnp.float32)


def _pick_tm(m):
    # Largest M tile that still gives >= 4 grid steps (pipelining + both v7x cores);
    # the ragged last M block is handled by the cdiv grid (Pallas clips its stores).
    for t in (512, 256, 128):
        if pl.cdiv(m, t) >= 4:
            return t
    return min(128, _round_up(m, 8))


def matmul_pallas(a_bf16, b_bf16):
    """(M, K)bf16 @ (K, N)bf16 -> (M, N)f32. Full K/N panel resident, M cdiv-tiled."""
    M, K = a_bf16.shape
    K2, N = b_bf16.shape
    assert K == K2 and N % 128 == 0
    tm = _pick_tm(M)
    est = 2 * tm * K * 2 + K * N * 2 + 2 * tm * N * 4
    return pl.pallas_call(
        _matmul_kernel,
        out_shape=jax.ShapeDtypeStruct((M, N), jnp.float32),
        grid=(pl.cdiv(M, tm),),
        in_specs=[
            pl.BlockSpec((tm, K), lambda i: (i, 0)),
            pl.BlockSpec((K, N), lambda i: (0, 0)),
        ],
        out_specs=pl.BlockSpec((tm, N), lambda i: (i, 0)),
        compiler_params=pltpu.CompilerParams(
            dimension_semantics=("parallel",),
            vmem_limit_bytes=_vmem_limit(est)),
    )(a_bf16, b_bf16)


# ----------------------------------------------------------------------------
# XLA glue: DCNv1 bilinear sampling (tap-major im2col columns, no mask)
# ----------------------------------------------------------------------------
def _bilinear_sample_cols(x_nhwc, offset_nhwc, out_dtype=jnp.float32):
    """x: (B,H,W,Cin) f32; offset: (B,H,W,18) with mmcv layout (dy,dx) interleaved
    per kernel tap k = i*3+j.  Returns tap-major columns (B, H, W, 9, Cin)."""
    B, H, W, Cin = x_nhwc.shape
    K = 9
    iy = jnp.repeat(jnp.arange(3, dtype=jnp.float32), 3)   # tap row offsets
    ix = jnp.tile(jnp.arange(3, dtype=jnp.float32), 3)     # tap col offsets
    dy = offset_nhwc[..., 0::2]                             # (B, H, W, 9)
    dx = offset_nhwc[..., 1::2]
    base_y = jnp.arange(H, dtype=jnp.float32)[None, :, None, None]
    base_x = jnp.arange(W, dtype=jnp.float32)[None, None, :, None]
    y = base_y - 1.0 + iy[None, None, None, :] + dy
    x = base_x - 1.0 + ix[None, None, None, :] + dx
    y0 = jnp.floor(y)
    x0 = jnp.floor(x)
    wy1 = y - y0
    wy0 = 1.0 - wy1
    wx1 = x - x0
    wx0 = 1.0 - wx1

    x_flat = x_nhwc.reshape(B, H * W, Cin)

    def gather(yi, xi):
        valid = (yi >= 0) & (yi <= H - 1) & (xi >= 0) & (xi <= W - 1)
        yc = jnp.clip(yi, 0, H - 1).astype(jnp.int32)
        xc = jnp.clip(xi, 0, W - 1).astype(jnp.int32)
        idx = (yc * W + xc).reshape(B, H * W * K)
        vals = jnp.take_along_axis(x_flat, idx[..., None], axis=1)
        vals = vals.reshape(B, H, W, K, Cin)
        return vals * valid[..., None].astype(vals.dtype)

    v00 = gather(y0, x0)
    v01 = gather(y0, x0 + 1.0)
    v10 = gather(y0 + 1.0, x0)
    v11 = gather(y0 + 1.0, x0 + 1.0)
    samp = (v00 * (wy0 * wx0)[..., None] + v01 * (wy0 * wx1)[..., None] +
            v10 * (wy1 * wx0)[..., None] + v11 * (wy1 * wx1)[..., None])
    # Cast at the producer so the 9x-sized im2col intermediate never round-trips
    # HBM in f32 when the consumer is the bf16 MXU matmul.
    return samp.astype(out_dtype)  # (B, H, W, 9, Cin), tap-major then channel


# ----------------------------------------------------------------------------
# DeformConvWithOff forward
# ----------------------------------------------------------------------------
def deform_conv_with_off_forward(x_nchw, params):
    """x: (B, Cin, H, W) float32 (NCHW, PyTorch convention). Returns (B, Cout, H, W)."""
    w_off, b_off, w_dcn = params["w_off"], params["b_off"], params["w_dcn"]
    B, Cin, H, W = x_nchw.shape
    n_off = w_off.shape[0]                     # deformable_groups * 2 * 3 * 3 = 18
    Cout = w_dcn.shape[0]
    np_off = _round_up(n_off, 128)
    np_out = _round_up(Cout, 128)

    x_nhwc = x_nchw.transpose(0, 2, 3, 1)      # NHWC internally (single transpose)

    # 1) offset conv (3x3, pad=1, with bias) -- fused Pallas kernel, lane-padded N.
    w9 = w_off.transpose(2, 3, 1, 0).reshape(9, Cin, n_off)          # tap-major
    w9p = jnp.zeros((9, Cin, np_off), jnp.bfloat16).at[:, :, :n_off].set(
        w9.astype(jnp.bfloat16))
    bp = jnp.zeros((np_off,), jnp.float32).at[:n_off].set(b_off)
    offset = conv3x3_pallas(x_nhwc, w9p, bp)[..., :n_off]            # (B, H, W, 18) f32

    # 2) deformable conv (DCNv1, bias=False).
    # TODO(synk): the data-dependent bilinear gather stays in XLA (take_along_axis);
    #             arbitrary per-pixel gathers have no robust Pallas TPU lowering yet.
    cols = _bilinear_sample_cols(x_nhwc, offset, out_dtype=jnp.bfloat16)  # (B,H,W,9,Cin)
    a = cols.reshape(B * H * W, 9 * Cin)                             # tap-major: free reshape
    wt = w_dcn.transpose(2, 3, 1, 0).reshape(9 * Cin, Cout)          # rows: k*Cin + c
    wtp = jnp.zeros((9 * Cin, np_out), jnp.bfloat16).at[:, :Cout].set(
        wt.astype(jnp.bfloat16))
    y = matmul_pallas(a, wtp)                                        # (B*H*W, np_out) f32
    y = y.reshape(B, H, W, np_out)[..., :Cout]
    return y.transpose(0, 3, 1, 2)                                   # back to NCHW


# ----------------------------------------------------------------------------
# Pure-JAX f32 reference (loose-tolerance correctness check)
# ----------------------------------------------------------------------------
def _reference_forward(x_nchw, params):
    w_off, b_off, w_dcn = params["w_off"], params["b_off"], params["w_dcn"]
    B, Cin, H, W = x_nchw.shape
    Cout = w_dcn.shape[0]
    off = jax.lax.conv_general_dilated(
        x_nchw, w_off, window_strides=(1, 1), padding=((1, 1), (1, 1)),
        dimension_numbers=("NCHW", "OIHW", "NCHW"),
        precision=jax.lax.Precision.HIGHEST)
    off = off + b_off[None, :, None, None]
    x_nhwc = x_nchw.transpose(0, 2, 3, 1)
    cols = _bilinear_sample_cols(x_nhwc, off.transpose(0, 2, 3, 1))  # f32
    wt = w_dcn.transpose(2, 3, 1, 0).reshape(9 * Cin, Cout)
    y = jnp.dot(cols.reshape(B * H * W, 9 * Cin), wt,
                precision=jax.lax.Precision.HIGHEST)
    return y.reshape(B, H, W, Cout).transpose(0, 3, 1, 2)


# ----------------------------------------------------------------------------
# Deterministic parameter init (mirrors the PyTorch module's shapes)
# ----------------------------------------------------------------------------
def init_params(key, in_channels, out_channels, kernel_size=3, deformable_groups=1):
    k1, k2, k3 = jax.random.split(key, 3)
    off_ch = deformable_groups * 2 * kernel_size * kernel_size       # 18
    fan_in = in_channels * kernel_size * kernel_size
    # offset_conv: Conv2d(Cin, 18, 3, pad=1) with bias (kept non-zero so the
    # bilinear sampling path is genuinely exercised).
    w_off = jax.random.normal(k1, (off_ch, in_channels, 3, 3), jnp.float32) * (1.0 / fan_in) ** 0.5
    b_off = 0.1 * jax.random.normal(k2, (off_ch,), jnp.float32)
    # DeformConv weight (Cout, Cin, 3, 3); bias=False in the reference module.
    w_dcn = jax.random.normal(k3, (out_channels, in_channels, 3, 3), jnp.float32) * (1.0 / fan_in) ** 0.5
    return dict(w_off=w_off, b_off=b_off, w_dcn=w_dcn)


if __name__ == "__main__":
    B, Cin, H, W = 2, 8, 16, 16
    Cout = 32

    key = jax.random.PRNGKey(0)
    kx, kp = jax.random.split(key)
    x = jax.random.normal(kx, (B, Cin, H, W), jnp.float32)
    params = init_params(kp, Cin, Cout)

    fwd = jax.jit(deform_conv_with_off_forward)
    out = jax.block_until_ready(fwd(x, params))
    assert out.shape == (B, Cout, H, W), out.shape
    assert bool(jnp.all(jnp.isfinite(out)))

    # Loose-tolerance check vs pure-f32 reference (Pallas path runs bf16 on the MXU;
    # near-integer sample coords can flip a bilinear corner vs the f32 reference).
    ref = _reference_forward(x, params)
    err = float(jnp.max(jnp.abs(out - ref)))
    assert err < 0.15, f"max |err| = {err}"
    print("KERNEL_OK")
</pallas_src>

<mosaic_0001>
module attributes {stable_mosaic.version = 11 : i64} {
  func.func @kernel(%arg0: i32, %arg1: i32, %arg2: memref<1x424x8xf32, #tpu.memory_space<vmem>>, %arg3: memref<9x8x128xbf16, #tpu.memory_space<vmem>>, %arg4: memref<1x128xf32, #tpu.memory_space<vmem>>, %arg5: memref<1x128x128xf32, #tpu.memory_space<vmem>>) attributes {dimension_semantics = [#tpu.dimension_semantics<parallel>, #tpu.dimension_semantics<parallel>], iteration_bounds = array<i64: 2, 3>, scalar_prefetch = 0 : i64, scratch_operands = 0 : i64, tpu.core_type = #tpu.core_type<tc>, window_params = [{transform_indices = @transform_0, window_bounds = array<i64: 1, 424, 8>}, {pipeline_mode = #tpu.pipeline_mode<synchronous>, transform_indices = @transform_1, window_bounds = array<i64: 9, 8, 128>}, {pipeline_mode = #tpu.pipeline_mode<synchronous>, transform_indices = @transform_2, window_bounds = array<i64: 1, 128>}, {transform_indices = @transform_3, window_bounds = array<i64: 1, 128, 128>}]} {
    %c128_i32 = arith.constant 128 : i32
    %0 = arith.muli %arg1, %c128_i32 : i32
    %1 = tpu.assume_multiple %0, 8 : i32
    %cst = arith.constant 0.000000e+00 : f32
    %2 = vector.broadcast %cst : f32 to vector<128x128xf32>
    %c0_i32 = arith.constant 0 : i32
    %3 = arith.addi %1, %c0_i32 : i32
    %c0_i32_0 = arith.constant 0 : i32
    %4 = arith.addi %3, %c0_i32_0 : i32
    %c0 = arith.constant 0 : index
    %5 = arith.index_cast %4 : i32 to index
    %c0_1 = arith.constant 0 : index
    %6 = vector.load %arg2[%c0, %5, %c0_1] : memref<1x424x8xf32, #tpu.memory_space<vmem>>, vector<1x128x8xf32>
    %7 = vector.shape_cast %6 : vector<1x128x8xf32> to vector<128x8xf32>
    %8 = arith.truncf %7 : vector<128x8xf32> to vector<128x8xbf16>
    %c0_2 = arith.constant 0 : index
    %c0_3 = arith.constant 0 : index
    %c0_4 = arith.constant 0 : index
    %9 = vector.load %arg3[%c0_2, %c0_3, %c0_4] : memref<9x8x128xbf16, #tpu.memory_space<vmem>>, vector<1x8x128xbf16>
    %10 = vector.shape_cast %9 : vector<1x8x128xbf16> to vector<8x128xbf16>
    %cst_5 = arith.constant dense<0.000000e+00> : vector<128x128xf32>
    %11 = tpu.matmul %8, %10, %cst_5 {dimension_numbers = #tpu.dot_dimension_numbers<[1], [0], [0], [1], [0, 0, 1, 1], [], []>} : vector<128x8xbf16>, vector<8x128xbf16>, vector<128x128xf32> -> vector<128x128xf32>
    %12 = arith.addf %2, %11 : vector<128x128xf32>
    %c0_i32_6 = arith.constant 0 : i32
    %13 = arith.addi %1, %c0_i32_6 : i32
    %c1_i32 = arith.constant 1 : i32
    %14 = arith.addi %13, %c1_i32 : i32
    %c0_7 = arith.constant 0 : index
    %15 = arith.index_cast %14 : i32 to index
    %c0_8 = arith.constant 0 : index
    %16 = vector.load %arg2[%c0_7, %15, %c0_8] : memref<1x424x8xf32, #tpu.memory_space<vmem>>, vector<1x128x8xf32>
    %17 = vector.shape_cast %16 : vector<1x128x8xf32> to vector<128x8xf32>
    %18 = arith.truncf %17 : vector<128x8xf32> to vector<128x8xbf16>
    %c1 = arith.constant 1 : index
    %c0_9 = arith.constant 0 : index
    %c0_10 = arith.constant 0 : index
    %19 = vector.load %arg3[%c1, %c0_9, %c0_10] : memref<9x8x128xbf16, #tpu.memory_space<vmem>>, vector<1x8x128xbf16>
    %20 = vector.shape_cast %19 : vector<1x8x128xbf16> to vector<8x128xbf16>
    %cst_11 = arith.constant dense<0.000000e+00> : vector<128x128xf32>
    %21 = tpu.matmul %18, %20, %cst_11 {dimension_numbers = #tpu.dot_dimension_numbers<[1], [0], [0], [1], [0, 0, 1, 1], [], []>} : vector<128x8xbf16>, vector<8x128xbf16>, vector<128x128xf32> -> vector<128x128xf32>
    %22 = arith.addf %12, %21 : vector<128x128xf32>
    %c0_i32_12 = arith.constant 0 : i32
    %23 = arith.addi %1, %c0_i32_12 : i32
    %c2_i32 = arith.constant 2 : i32
    %24 = arith.addi %23, %c2_i32 : i32
    %c0_13 = arith.constant 0 : index
    %25 = arith.index_cast %24 : i32 to index
    %c0_14 = arith.constant 0 : index
    %26 = vector.load %arg2[%c0_13, %25, %c0_14] : memref<1x424x8xf32, #tpu.memory_space<vmem>>, vector<1x128x8xf32>
    %27 = vector.shape_cast %26 : vector<1x128x8xf32> to vector<128x8xf32>
    %28 = arith.truncf %27 : vector<128x8xf32> to vector<128x8xbf16>
    %c2 = arith.constant 2 : index
    %c0_15 = arith.constant 0 : index
    %c0_16 = arith.constant 0 : index
    %29 = vector.load %arg3[%c2, %c0_15, %c0_16] : memref<9x8x128xbf16, #tpu.memory_space<vmem>>, vector<1x8x128xbf16>
    %30 = vector.shape_cast %29 : vector<1x8x128xbf16> to vector<8x128xbf16>
    %cst_17 = arith.constant dense<0.000000e+00> : vector<128x128xf32>
    %31 = tpu.matmul %28, %30, %cst_17 {dimension_numbers = #tpu.dot_dimension_numbers<[1], [0], [0], [1], [0, 0, 1, 1], [], []>} : vector<128x8xbf16>, vector<8x128xbf16>, vector<128x128xf32> -> vector<128x128xf32>
    %32 = arith.addf %22, %31 : vector<128x128xf32>
    %c18_i32 = arith.constant 18 : i32
    %33 = arith.addi %1, %c18_i32 : i32
    %c0_i32_18 = arith.constant 0 : i32
    %34 = arith.addi %33, %c0_i32_18 : i32
    %c0_19 = arith.constant 0 : index
    %35 = arith.index_cast %34 : i32 to index
    %c0_20 = arith.constant 0 : index
    %36 = vector.load %arg2[%c0_19, %35, %c0_20] : memref<1x424x8xf32, #tpu.memory_space<vmem>>, vector<1x128x8xf32>
    %37 = vector.shape_cast %36 : vector<1x128x8xf32> to vector<128x8xf32>
    %38 = arith.truncf %37 : vector<128x8xf32> to vector<128x8xbf16>
    %c3 = arith.constant 3 : index
    %c0_21 = arith.constant 0 : index
    %c0_22 = arith.constant 0 : index
    %39 = vector.load %arg3[%c3, %c0_21, %c0_22] : memref<9x8x128xbf16, #tpu.memory_space<vmem>>, vector<1x8x128xbf16>
    %40 = vector.shape_cast %39 : vector<1x8x128xbf16> to vector<8x128xbf16>
    %cst_23 = arith.constant dense<0.000000e+00> : vector<128x128xf32>
    %41 = tpu.matmul %38, %40, %cst_23 {dimension_numbers = #tpu.dot_dimension_numbers<[1], [0], [0], [1], [0, 0, 1, 1], [], []>} : vector<128x8xbf16>, vector<8x128xbf16>, vector<128x128xf32> -> vector<128x128xf32>
    %42 = arith.addf %32, %41 : vector<128x128xf32>
    %c18_i32_24 = arith.constant 18 : i32
    %43 = arith.addi %1, %c18_i32_24 : i32
    %c1_i32_25 = arith.constant 1 : i32
    %44 = arith.addi %43, %c1_i32_25 : i32
    %c0_26 = arith.constant 0 : index
    %45 = arith.index_cast %44 : i32 to index
    %c0_27 = arith.constant 0 : index
    %46 = vector.load %arg2[%c0_26, %45, %c0_27] : memref<1x424x8xf32, #tpu.memory_space<vmem>>, vector<1x128x8xf32>
    %47 = vector.shape_cast %46 : vector<1x128x8xf32> to vector<128x8xf32>
    %48 = arith.truncf %47 : vector<128x8xf32> to vector<128x8xbf16>
    %c4 = arith.constant 4 : index
    %c0_28 = arith.constant 0 : index
    %c0_29 = arith.constant 0 : index
    %49 = vector.load %arg3[%c4, %c0_28, %c0_29] : memref<9x8x128xbf16, #tpu.memory_space<vmem>>, vector<1x8x128xbf16>
    %50 = vector.shape_cast %49 : vector<1x8x128xbf16> to vector<8x128xbf16>
    %cst_30 = arith.constant dense<0.000000e+00> : vector<128x128xf32>
    %51 = tpu.matmul %48, %50, %cst_30 {dimension_numbers = #tpu.dot_dimension_numbers<[1], [0], [0], [1], [0, 0, 1, 1], [], []>} : vector<128x8xbf16>, vector<8x128xbf16>, vector<128x128xf32> -> vector<128x128xf32>
    %52 = arith.addf %42, %51 : vector<128x128xf32>
    %c18_i32_31 = arith.constant 18 : i32
    %53 = arith.addi %1, %c18_i32_31 : i32
    %c2_i32_32 = arith.constant 2 : i32
    %54 = arith.addi %53, %c2_i32_32 : i32
    %c0_33 = arith.constant 0 : index
    %55 = arith.index_cast %54 : i32 to index
    %c0_34 = arith.constant 0 : index
    %56 = vector.load %arg2[%c0_33, %55, %c0_34] : memref<1x424x8xf32, #tpu.memory_space<vmem>>, vector<1x128x8xf32>
    %57 = vector.shape_cast %56 : vector<1x128x8xf32> to vector<128x8xf32>
    %58 = arith.truncf %57 : vector<128x8xf32> to vector<128x8xbf16>
    %c5 = arith.constant 5 : index
    %c0_35 = arith.constant 0 : index
    %c0_36 = arith.constant 0 : index
    %59 = vector.load %arg3[%c5, %c0_35, %c0_36] : memref<9x8x128xbf16, #tpu.memory_space<vmem>>, vector<1x8x128xbf16>
    %60 = vector.shape_cast %59 : vector<1x8x128xbf16> to vector<8x128xbf16>
    %cst_37 = arith.constant dense<0.000000e+00> : vector<128x128xf32>
    %61 = tpu.matmul %58, %60, %cst_37 {dimension_numbers = #tpu.dot_dimension_numbers<[1], [0], [0], [1], [0, 0, 1, 1], [], []>} : vector<128x8xbf16>, vector<8x128xbf16>, vector<128x128xf32> -> vector<128x128xf32>
    %62 = arith.addf %52, %61 : vector<128x128xf32>
    %c36_i32 = arith.constant 36 : i32
    %63 = arith.addi %1, %c36_i32 : i32
    %c0_i32_38 = arith.constant 0 : i32
    %64 = arith.addi %63, %c0_i32_38 : i32
    %c0_39 = arith.constant 0 : index
    %65 = arith.index_cast %64 : i32 to index
    %c0_40 = arith.constant 0 : index
    %66 = vector.load %arg2[%c0_39, %65, %c0_40] : memref<1x424x8xf32, #tpu.memory_space<vmem>>, vector<1x128x8xf32>
    %67 = vector.shape_cast %66 : vector<1x128x8xf32> to vector<128x8xf32>
    %68 = arith.truncf %67 : vector<128x8xf32> to vector<128x8xbf16>
    %c6 = arith.constant 6 : index
    %c0_41 = arith.constant 0 : index
    %c0_42 = arith.constant 0 : index
    %69 = vector.load %arg3[%c6, %c0_41, %c0_42] : memref<9x8x128xbf16, #tpu.memory_space<vmem>>, vector<1x8x128xbf16>
    %70 = vector.shape_cast %69 : vector<1x8x128xbf16> to vector<8x128xbf16>
    %cst_43 = arith.constant dense<0.000000e+00> : vector<128x128xf32>
    %71 = tpu.matmul %68, %70, %cst_43 {dimension_numbers = #tpu.dot_dimension_numbers<[1], [0], [0], [1], [0, 0, 1, 1], [], []>} : vector<128x8xbf16>, vector<8x128xbf16>, vector<128x128xf32> -> vector<128x128xf32>
    %72 = arith.addf %62, %71 : vector<128x128xf32>
    %c36_i32_44 = arith.constant 36 : i32
    %73 = arith.addi %1, %c36_i32_44 : i32
    %c1_i32_45 = arith.constant 1 : i32
    %74 = arith.addi %73, %c1_i32_45 : i32
    %c0_46 = arith.constant 0 : index
    %75 = arith.index_cast %74 : i32 to index
    %c0_47 = arith.constant 0 : index
    %76 = vector.load %arg2[%c0_46, %75, %c0_47] : memref<1x424x8xf32, #tpu.memory_space<vmem>>, vector<1x128x8xf32>
    %77 = vector.shape_cast %76 : vector<1x128x8xf32> to vector<128x8xf32>
    %78 = arith.truncf %77 : vector<128x8xf32> to vector<128x8xbf16>
    %c7 = arith.constant 7 : index
    %c0_48 = arith.constant 0 : index
    %c0_49 = arith.constant 0 : index
    %79 = vector.load %arg3[%c7, %c0_48, %c0_49] : memref<9x8x128xbf16, #tpu.memory_space<vmem>>, vector<1x8x128xbf16>
    %80 = vector.shape_cast %79 : vector<1x8x128xbf16> to vector<8x128xbf16>
    %cst_50 = arith.constant dense<0.000000e+00> : vector<128x128xf32>
    %81 = tpu.matmul %78, %80, %cst_50 {dimension_numbers = #tpu.dot_dimension_numbers<[1], [0], [0], [1], [0, 0, 1, 1], [], []>} : vector<128x8xbf16>, vector<8x128xbf16>, vector<128x128xf32> -> vector<128x128xf32>
    %82 = arith.addf %72, %81 : vector<128x128xf32>
    %c36_i32_51 = arith.constant 36 : i32
    %83 = arith.addi %1, %c36_i32_51 : i32
    %c2_i32_52 = arith.constant 2 : i32
    %84 = arith.addi %83, %c2_i32_52 : i32
    %c0_53 = arith.constant 0 : index
    %85 = arith.index_cast %84 : i32 to index
    %c0_54 = arith.constant 0 : index
    %86 = vector.load %arg2[%c0_53, %85, %c0_54] : memref<1x424x8xf32, #tpu.memory_space<vmem>>, vector<1x128x8xf32>
    %87 = vector.shape_cast %86 : vector<1x128x8xf32> to vector<128x8xf32>
    %88 = arith.truncf %87 : vector<128x8xf32> to vector<128x8xbf16>
    %c8 = arith.constant 8 : index
    %c0_55 = arith.constant 0 : index
    %c0_56 = arith.constant 0 : index
    %89 = vector.load %arg3[%c8, %c0_55, %c0_56] : memref<9x8x128xbf16, #tpu.memory_space<vmem>>, vector<1x8x128xbf16>
    %90 = vector.shape_cast %89 : vector<1x8x128xbf16> to vector<8x128xbf16>
    %cst_57 = arith.constant dense<0.000000e+00> : vector<128x128xf32>
    %91 = tpu.matmul %88, %90, %cst_57 {dimension_numbers = #tpu.dot_dimension_numbers<[1], [0], [0], [1], [0, 0, 1, 1], [], []>} : vector<128x8xbf16>, vector<8x128xbf16>, vector<128x128xf32> -> vector<128x128xf32>
    %92 = arith.addf %82, %91 : vector<128x128xf32>
    %c0_58 = arith.constant 0 : index
    %c0_59 = arith.constant 0 : index
    %93 = vector.load %arg4[%c0_58, %c0_59] : memref<1x128xf32, #tpu.memory_space<vmem>>, vector<1x128xf32>
    %94 = vector.broadcast %93 : vector<1x128xf32> to vector<128x128xf32>
    %95 = arith.addf %92, %94 : vector<128x128xf32>
    %c0_60 = arith.constant 0 : index
    %c0_61 = arith.constant 0 : index
    %c0_62 = arith.constant 0 : index
    %96 = vector.load %arg5[%c0_60, %c0_61, %c0_62] : memref<1x128x128xf32, #tpu.memory_space<vmem>>, vector<1x128x128xf32>
    %97 = vector.shape_cast %96 : vector<1x128x128xf32> to vector<128x128xf32>
    %98 = vector.shape_cast %95 : vector<128x128xf32> to vector<1x128x128xf32>
    tpu.vector_store %arg5[%c0_60, %c0_61, %c0_62], %98 {strides = array<i32>} : memref<1x128x128xf32, #tpu.memory_space<vmem>>, vector<1x128x128xf32>,
    return
  }
  func.func @transform_0(%arg0: i32, %arg1: i32) -> (i32, i32, i32) {
    %c0_i32 = arith.constant 0 : i32
    %c0_i32_0 = arith.constant 0 : i32
    %c0_i32_1 = arith.constant 0 : i32
    return %arg0, %c0_i32, %c0_i32_0 : i32, i32, i32
  }
  func.func @transform_1(%arg0: i32, %arg1: i32) -> (i32, i32, i32) {
    %c0_i32 = arith.constant 0 : i32
    %c0_i32_0 = arith.constant 0 : i32
    %c0_i32_1 = arith.constant 0 : i32
    %c0_i32_2 = arith.constant 0 : i32
    return %c0_i32, %c0_i32_0, %c0_i32_1 : i32, i32, i32
  }
  func.func @transform_2(%arg0: i32, %arg1: i32) -> (i32, i32) {
    %c0_i32 = arith.constant 0 : i32
    %c0_i32_0 = arith.constant 0 : i32
    %c0_i32_1 = arith.constant 0 : i32
    return %c0_i32, %c0_i32_0 : i32, i32
  }
  func.func @transform_3(%arg0: i32, %arg1: i32) -> (i32, i32, i32) {
    %c0_i32 = arith.constant 0 : i32
    %c0_i32_0 = arith.constant 0 : i32
    return %arg0, %arg1, %c0_i32 : i32, i32, i32
  }
}

module attributes {stable_mosaic.version = 11 : i64} {
  func.func @_matmul_kernel(%arg0: i32, %arg1: memref<128x72xbf16, #tpu.memory_space<vmem>>, %arg2: memref<72x128xbf16, #tpu.memory_space<vmem>>, %arg3: memref<128x128xf32, #tpu.memory_space<vmem>>) attributes {dimension_semantics = [#tpu.dimension_semantics<parallel>], iteration_bounds = array<i64: 4>, scalar_prefetch = 0 : i64, scratch_operands = 0 : i64, tpu.core_type = #tpu.core_type<tc>, window_params = [{transform_indices = @transform_0, window_bounds = array<i64: 128, 72>}, {pipeline_mode = #tpu.pipeline_mode<synchronous>, transform_indices = @transform_1, window_bounds = array<i64: 72, 128>}, {transform_indices = @transform_2, window_bounds = array<i64: 128, 128>}]} {
    %c0 = arith.constant 0 : index
    %c0_0 = arith.constant 0 : index
    %0 = vector.load %arg1[%c0, %c0_0] : memref<128x72xbf16, #tpu.memory_space<vmem>>, vector<128x72xbf16>
    %c0_1 = arith.constant 0 : index
    %c0_2 = arith.constant 0 : index
    %1 = vector.load %arg2[%c0_1, %c0_2] : memref<72x128xbf16, #tpu.memory_space<vmem>>, vector<72x128xbf16>
    %cst = arith.constant dense<0.000000e+00> : vector<128x128xf32>
    %2 = tpu.matmul %0, %1, %cst {dimension_numbers = #tpu.dot_dimension_numbers<[1], [0], [0], [1], [0, 0, 1, 1], [], []>} : vector<128x72xbf16>, vector<72x128xbf16>, vector<128x128xf32> -> vector<128x128xf32>
    %c0_3 = arith.constant 0 : index
    %c0_4 = arith.constant 0 : index
    %3 = vector.load %arg3[%c0_3, %c0_4] : memref<128x128xf32, #tpu.memory_space<vmem>>, vector<128x128xf32>
    tpu.vector_store %arg3[%c0_3, %c0_4], %2 {strides = array<i32>} : memref<128x128xf32, #tpu.memory_space<vmem>>, vector<128x128xf32>,
    return
  }
  func.func @transform_0(%arg0: i32) -> (i32, i32) {
    %c0_i32 = arith.constant 0 : i32
    %c0_i32_0 = arith.constant 0 : i32
    return %arg0, %c0_i32 : i32, i32
  }
  func.func @transform_1(%arg0: i32) -> (i32, i32) {
    %c0_i32 = arith.constant 0 : i32
    %c0_i32_0 = arith.constant 0 : i32
    %c0_i32_1 = arith.constant 0 : i32
    return %c0_i32, %c0_i32_0 : i32, i32
  }
  func.func @transform_2(%arg0: i32) -> (i32, i32) {
    %c0_i32 = arith.constant 0 : i32
    %c0_i32_0 = arith.constant 0 : i32
    return %arg0, %c0_i32 : i32, i32
  }
}

</mosaic_0001>

<bundles_post_ra>
// kernel: deform_conv_with_off_forward.2
= control target key start
LH: loop header
LB: loop body
LE: loop exit
PB: predicated region body
PF: predicated region fallthrough
CT: control target
= control target key end

     0   :  { %s2784_s12 = smov 0   ;;  %s2786_s13 = smov 0   ;;  %s3436_s0 = inlined_call_operand.vmem [shape: f32[2,424,8], index: 0, kind: input, shape index: {}]   ;;  %s3437_s1 = inlined_call_operand.vmem [shape: bf16[9,8,128], index: 1, kind: input, shape index: {}]   ;;  %s3438_s2 = inlined_call_operand.vmem [shape: f32[1,128], index: 2, kind: input, shape index: {}]   ;;  %s3439_s3 = inlined_call_operand.vmem [shape: f32[2,288,128], index: 3, kind: output, shape index: {}]  }
   0x1   :  { %s2788_s14 = smov 0   ;;  %s2790_s15 = smov 0  }
   0x2   :  { %s2792_s16 = smov 0   ;;  %s2794_s17 = smov 0  }
   0x3   :  { %s2796_s18 = smov 0  }
   0x4 LB: > { %s22_s19 = sadd.s32 1, %s2722_s16  ;;  %s25_s20 = sadd.s32 1, %s2726_s17  ;;  %s2730_s18 = sphi %s2796_s18, %s13_s18   ;;  %s2726_s17 = sphi %s2794_s17, %s3489_s17   ;;  %s2722_s16 = sphi %s2792_s16, %s3488_s16   ;;  %s2718_s15 = sphi %s2790_s15, %s3487_s15   ;;  %s2714_s14 = sphi %s2788_s14, %s3486_s14   ;;  %s2710_s13 = sphi %s2786_s13, %s3485_s13   ;;  %s2706_s12 = sphi %s2784_s12, %s3484_s12  }
   0x5   : > { %p23_p0 = scmp.ge.s32.totalorder %s22_s19, 3  ;;  %s2023_s21 = sadd.s32 4294967295, %s2730_s18  }
   0x6   : > { %p112_p1 = scmp.ne.s32.totalorder %s2710_s13, %s2706_s12  ;;  %p113_p2 = scmp.eq.s32.totalorder %s2023_s21, 5 }
   0x7   : > { %s3491_s19 = smov (%p23_p0, %s22_s19), 0  ;;  %s3493_s20 = smov (!%p23_p0, %s25_s20), %s2726_s17 }
   0x8   : > { %s98_s22 = ssub.s32 %s2722_s16, %s3491_s19  ;;  %p27_p3 = scmp.ge.s32.totalorder %s3493_s20, 2 }
   0x9   : > { %p2027_p4 = scmp.ge.s32.totalorder %s2730_s18, 1  ;;  %p2830_p5 = por %p113_p2, %p112_p1 }
   0xa   : > { %p151_p6 = scmp.lt.s32.totalorder %s2730_s18, 7  ;;  %s3495_s20 = smov (%p27_p3, %s3493_s20), 0 }
   0xb   : > { %s97_s24 = ssub.s32 %s2726_s17, %s3495_s20  ;;  %s102_s26 = sadd.s32 1, %s2710_s13 }
   0xc   : > { %p152_p7 = pnand %p2027_p4, %p151_p6  ;;  %s99_s25 = sor.u32 %s98_s22, %s97_s24 }
   0xd   : > { %p100_p8 = scmp.eq.s32.totalorder %s99_s25, 0 }
   0xe   : > { %155 = sbr.rel (%p152_p7) target bundleno = 415 (0x19f), region = 32 }
   0xf   : > { %s2841_s27 = scalar_select %p100_p8, %s2710_s13, %s102_s26  }
  0x13   : > { %v2048_v0 = vld [vmem:[%s3437_s1 + $0x4] sm:$0xf]  ;;  %vm265_vm0 = vcmask 1043456   ;;  %p174_p9 = scmp.lt.s32.totalorder %s2718_s15, 1  ;;  %v211_v2 = vld [vmem:[%s3437_s1] sm:$0xf] }
  0x14   : > { %2513 = vmatprep.subr.msk.bf16.mxu1 %vm265_vm0, %v2048_v0  ;;  %2512 = vmatprep.subr.msk.bf16.mxu0 %vm265_vm0, %v2048_v0  ;;  %v267_v1 = vsel %vm265_vm0, %v2048_v0, 0  ;;  %v2082_v3 = vld [vmem:[%s3437_s1 + $0x8] sm:$0xf]  ;;  %s2030_s9 = sshll.u32 %s2714_s14, 7  ;;  %vm240_vm1 = vcmask 64512   ;;  %v391_v18 = vsel %vm265_vm0, %v211_v2, 0 }
  0x15   : > { %2511 = vmatpush3.bf16.msra.mxu1 %v267_v1  ;;  %2349 = vmatpush3.bf16.msra.mxu0 %v267_v1  ;;  %s175_s7 = scalar_select %p174_p9, %s2718_s15, 1  ;;  %v543_v15 = vsel %vm265_vm0, %v2082_v3, 0  ;;  %v2108_v24 = vld [vmem:[%s3437_s1 + $0xc] sm:$0xf]  ;;  %v2134_v25 = vld [vmem:[%s3437_s1 + $0x10] sm:$0xf] }
  0x16   : > { %2514 = vmatprep.subr.msk.bf16.mxu1 %vm265_vm0, %v211_v2  ;;  %2515 = vmatprep.subr.msk.bf16.mxu0 %vm265_vm0, %v2082_v3  ;;  %v879_v48 = vsel %vm265_vm0, %v2134_v25, 0  ;;  %v711_v50 = vsel %vm265_vm0, %v2108_v24, 0  ;;  %v2160_v52 = vld [vmem:[%s3437_s1 + $0x14] sm:$0xf]  ;;  %v2186_v53 = vld [vmem:[%s3437_s1 + $0x18] sm:$0xf] }
  0x17   : > { %s2522_s8 = smul.u32 424, %s175_s7  ;;  %s171_s10 = sand.u32 1, %s2706_s12  }
  0x18   : > { %s2028_s11 = sshll.u32 %s171_s10, 7  ;;  %s2249_s24 = sshll.u32 (%p2830_p5), %s2714_s14, 4 }
  0x19   : > { %s178_s21 = scalar_lea.vmem %s3436_s0, %s2522_s8  ;;  %s2523_s25 = smul.u32 (%p2830_p5), 36, %s2718_s15 }
  0x1a   : > { %s2863_s22 = scalar_lea.vmem %s178_s21, %s2030_s9  ;;  %s1713_s26 = ssub.s32 (%p2830_p5), 36, %s2249_s24 }
  0x1b   : > { %v2032_v4 = vld [vmem:[%s2863_s22 + $0x1] sm:$0xff]  ;;  %v2033_v5 = vld [vmem:[%s2863_s22 + $0x9] sm:$0xff]  ;;  %v2034_v9 = vld [vmem:[%s2863_s22 + $0x11] sm:$0xff]  ;;  %p1714_p10 = scmp.lt.s32.totalorder (%p2830_p5), %s1713_s26, 16  ;;  %s1719_s28 = sadd.s32 (%p2830_p5), %s2523_s25, %s2249_s24 }
  0x1c   : > { %v2040_v6 = vld [vmem:[%s2863_s22 + $0x41] sm:$0xff]  ;;  %v230_v7 = vpack.c.bf16 %v2033_v5, %v2032_v4  ;;  %v2041_v8 = vld [vmem:[%s2863_s22 + $0x49] sm:$0xff]  ;;  %v2035_v10 = vld [vmem:[%s2863_s22 + $0x19] sm:$0xff]  ;;  %s2252_s29 = sshll.u32 (%p2830_p5), %s1719_s28, 3 }
  0x1d   : > { %v234_v11 = vpack.c.bf16 %v2041_v8, %v2040_v6  ;;  %v231_v12 = vpack.c.bf16 %v2035_v10, %v2034_v9  ;;  %v2042_v13 = vld [vmem:[%s2863_s22 + $0x51] sm:$0xff]  ;;  %v2043_v14 = vld [vmem:[%s2863_s22 + $0x59] sm:$0xff]  ;;  %v2036_v16 = vld [vmem:[%s2863_s22 + $0x21] sm:$0xff]  ;;  %s3334_s5 = scalar_lea.vmem (%p2830_p5), %s3439_s3, %s2252_s29  }
  0x1e   : > { %2350 = vmatprep.mubr.msk.bf16.mxu0 %vm240_vm1, %v230_v7  ;;  %v235_v17 = vpack.c.bf16 %v2043_v14, %v2042_v13  ;;  %v2037_v19 = vld [vmem:[%s2863_s22 + $0x29] sm:$0xff]  ;;  %v2044_v20 = vld [vmem:[%s2863_s22 + $0x61] sm:$0xff]  ;;  %v2038_v26 = vld [vmem:[%s2863_s22 + $0x31] sm:$0xff] }
  0x1f   : > { %v2045_v21 = vld [vmem:[%s2863_s22 + $0x69] sm:$0xff]  ;;  %2358 = vmatprep.mubr.msk.bf16.mxu1 %vm240_vm1, %v234_v11  ;;  %2351 = vmatmul.mubr.msk.bf16.vlgmr.msra.gmra.mxu0 %vm240_vm1, %v231_v12  ;;  %v232_v22 = vpack.c.bf16 %v2037_v19, %v2036_v16  ;;  %v2039_v27 = vld [vmem:[%s2863_s22 + $0x39] sm:$0xff]  ;;  %v2046_v28 = vld [vmem:[%s2863_s22 + $0x71] sm:$0xff] }
  0x20   : > { %v236_v23 = vpack.c.bf16 %v2045_v21, %v2044_v20  ;;  %2359 = vmatmul.mubr.msk.bf16.vlgmr.msra.gmra.mxu1 %vm240_vm1, %v235_v17  ;;  %2385 = vmatpush3.bf16.msra.mxu0 %v543_v15  ;;  %v2047_v29 = vld [vmem:[%s2863_s22 + $0x79] sm:$0xff]  ;;  %v2066_v30 = vld [vmem:[%s2863_s22 + $0x2] sm:$0xff]  ;;  %v2067_v31 = vld [vmem:[%s2863_s22 + $0xa] sm:$0xff]  ;;  %v233_v34 = vpack.c.bf16 %v2039_v27, %v2038_v26 }
  0x21   : > { %2367 = vmatpush3.bf16.msra.mxu1 %v391_v18  ;;  %2354 = vmatprep.mubr.msk.bf16.mxu0 %vm240_vm1, %v232_v22  ;;  %v187_v32 = vld [vmem:[%s2863_s22] sm:$0xff]  ;;  %v188_v33 = vld [vmem:[%s2863_s22 + $0x8] sm:$0xff]  ;;  %v237_v35 = vpack.c.bf16 %v2047_v29, %v2046_v28  ;;  %v508_v36 = vpack.c.bf16 %v2067_v31, %v2066_v30  ;;  %v2068_v38 = vld [vmem:[%s2863_s22 + $0x12] sm:$0xff]  ;;  %v1215_v28 = vsel %vm265_vm0, %v2186_v53, 0  ;;  %v1047_v29 = vsel %vm265_vm0, %v2160_v52, 0 }
  0x22   : > { %2362 = vmatprep.mubr.msk.bf16.mxu1 %vm240_vm1, %v236_v23  ;;  %2516 = vmatprep.subr.msk.bf16.mxu1 %vm265_vm0, %v2108_v24  ;;  %v203_v37 = vpack.c.bf16 %v188_v33, %v187_v32  ;;  %v2069_v39 = vld [vmem:[%s2863_s22 + $0x1a] sm:$0xff]  ;;  %v189_v40 = vld [vmem:[%s2863_s22 + $0x10] sm:$0xff]  ;;  %v192_v43 = vld [vmem:[%s2863_s22 + $0x28] sm:$0xff] }
  0x23   : > { %2517 = vmatprep.subr.msk.bf16.mxu0 %vm265_vm0, %v2134_v25  ;;  %v190_v41 = vld [vmem:[%s2863_s22 + $0x18] sm:$0xff]  ;;  %v191_v42 = vld [vmem:[%s2863_s22 + $0x20] sm:$0xff]  ;;  %v2911_v44 = vpack.c.bf16 %v2069_v39, %v2068_v38  ;;  %v2071_v46 = vld [vmem:[%s2863_s22 + $0x2a] sm:$0xff] }
  0x24   : > { %v2070_v45 = vld [vmem:[%s2863_s22 + $0x22] sm:$0xff]  ;;  %v204_v47 = vpack.c.bf16 %v190_v41, %v189_v40  ;;  %v205_v49 = vpack.c.bf16 %v192_v43, %v191_v42  ;;  %v193_v54 = vld [vmem:[%s2863_s22 + $0x30] sm:$0xff]  ;;  %v2073_v56 = vld [vmem:[%s2863_s22 + $0x3a] sm:$0xff] }
  0x25   : > { %v2917_v51 = vpack.c.bf16 %v2071_v46, %v2070_v45  ;;  %v2072_v55 = vld [vmem:[%s2863_s22 + $0x32] sm:$0xff]  ;;  %v2074_v58 = vld [vmem:[%s2863_s22 + $0x42] sm:$0xff]  ;;  %v2075_v59 = vld [vmem:[%s2863_s22 + $0x4a] sm:$0xff] }
  0x26   : > { %v194_v57 = vld [vmem:[%s2863_s22 + $0x38] sm:$0xff]  ;;  %v195_v60 = vld [vmem:[%s2863_s22 + $0x40] sm:$0xff]  ;;  %v196_v61 = vld [vmem:[%s2863_s22 + $0x48] sm:$0xff]  ;;  %v511_v62 = vpack.c.bf16 %v2073_v56, %v2072_v55  ;;  %v512_v0 = vpack.c.bf16 %v2075_v59, %v2074_v58 }
  0x27   : > { %2355 = vmatmul.mubr.msk.bf16.gmra.mxu0 %vm240_vm1, %v233_v34  ;;  %v206_v63 = vpack.c.bf16 %v194_v57, %v193_v54  ;;  %v207_v1 = vpack.c.bf16 %v196_v61, %v195_v60  ;;  %v197_v2 = vld [vmem:[%s2863_s22 + $0x50] sm:$0xff]  ;;  %v2077_v4 = vld [vmem:[%s2863_s22 + $0x5a] sm:$0xff]  ;;  %v2078_v6 = vld [vmem:[%s2863_s22 + $0x62] sm:$0xff] }
  0x28   : > { %2363 = vmatmul.mubr.msk.bf16.gmra.mxu1 %vm240_vm1, %v237_v35  ;;  %2386 = vmatprep.mubr.msk.bf16.mxu0 %vm240_vm1, %v508_v36  ;;  %v2076_v3 = vld [vmem:[%s2863_s22 + $0x52] sm:$0xff]  ;;  %v2079_v7 = vld [vmem:[%s2863_s22 + $0x6a] sm:$0xff]  ;;  %v199_v8 = vld [vmem:[%s2863_s22 + $0x60] sm:$0xff] }
  0x29   : > { %2368 = vmatprep.mubr.msk.bf16.mxu1 %vm240_vm1, %v203_v37  ;;  %v198_v5 = vld [vmem:[%s2863_s22 + $0x58] sm:$0xff]  ;;  %v200_v9 = vld [vmem:[%s2863_s22 + $0x68] sm:$0xff]  ;;  %v513_v10 = vpack.c.bf16 %v2077_v4, %v2076_v3  ;;  %v514_v12 = vpack.c.bf16 %v2079_v7, %v2078_v6  ;;  %v201_v14 = vld [vmem:[%s2863_s22 + $0x70] sm:$0xff] }
  0x2a   : > { %v208_v11 = vpack.c.bf16 %v198_v5, %v197_v2  ;;  %v209_v13 = vpack.c.bf16 %v200_v9, %v199_v8  ;;  %v2080_v15 = vld [vmem:[%s2863_s22 + $0x72] sm:$0xff]  ;;  %v2081_v16 = vld [vmem:[%s2863_s22 + $0x7a] sm:$0xff]  ;;  %v2120_v23 = vld [vmem:[%s2863_s22 + $0x23] sm:$0xff] }
  0x2b   : > { %v202_v17 = vld [vmem:[%s2863_s22 + $0x78] sm:$0xff]  ;;  %v515_v20 = vpack.c.bf16 %v2081_v16, %v2080_v15  ;;  %v2121_v24 = vld [vmem:[%s2863_s22 + $0x2b] sm:$0xff]  ;;  %v2124_v32 = vld [vmem:[%s2863_s22 + $0x43] sm:$0xff] }
  0x2c   : > { %v2118_v18 = vld [vmem:[%s2863_s22 + $0x13] sm:$0xff]  ;;  %v2119_v19 = vld [vmem:[%s2863_s22 + $0x1b] sm:$0xff]  ;;  %v210_v21 = vpack.c.bf16 %v202_v17, %v201_v14  ;;  %v845_v25 = vpack.c.bf16 %v2121_v24, %v2120_v23  ;;  %v2125_v33 = vld [vmem:[%s2863_s22 + $0x4b] sm:$0xff] }
  0x2d   : > { %v844_v22 = vpack.c.bf16 %v2119_v19, %v2118_v18  ;;  %v2122_v26 = vld [vmem:[%s2863_s22 + $0x33] sm:$0xff]  ;;  %v2123_v27 = vld [vmem:[%s2863_s22 + $0x3b] sm:$0xff]  ;;  %v847_v37 = vpack.c.bf16 %v2125_v33, %v2124_v32  ;;  %v2128_v39 = vld [vmem:[%s2863_s22 + $0x63] sm:$0xff] }
  0x2e   : > { %v846_v30 = vpack.c.bf16 %v2123_v27, %v2122_v26  ;;  %v2212_v31 = vld [vmem:[%s3437_s1 + $0x1c] sm:$0xf]  ;;  %v2238_v34 = vld [vmem:[%s3437_s1 + $0x20] sm:$0xf]  ;;  %v2126_v35 = vld [vmem:[%s2863_s22 + $0x53] sm:$0xff] }
  0x2f   : > { %2387 = vmatmul.mubr.msk.bf16.vlgmr.msra.gmra.mxu0 %vm240_vm1, %v2911_v44  ;;  %v2127_v36 = vld [vmem:[%s2863_s22 + $0x5b] sm:$0xff]  ;;  %v2129_v40 = vld [vmem:[%s2863_s22 + $0x6b] sm:$0xff]  ;;  %v2130_v41 = vld [vmem:[%s2863_s22 + $0x73] sm:$0xff] }
  0x30   : > { %2369 = vmatmul.mubr.msk.bf16.vlgmr.msra.gmra.mxu1 %vm240_vm1, %v204_v47  ;;  %2421 = vmatpush3.bf16.msra.mxu0 %v879_v48  ;;  %v848_v38 = vpack.c.bf16 %v2127_v36, %v2126_v35  ;;  %v2131_v42 = vld [vmem:[%s2863_s22 + $0x7b] sm:$0xff]  ;;  %v849_v43 = vpack.c.bf16 %v2129_v40, %v2128_v39  ;;  %v2132_v46 = vld [vmem:[%s2863_s22 + $0x83] sm:$0xff]  ;;  %v2133_v47 = vld [vmem:[%s2863_s22 + $0x8b] sm:$0xff] }
  0x31   : > { %2403 = vmatpush3.bf16.msra.mxu1 %v711_v50  ;;  %2372 = vmatprep.mubr.msk.bf16.mxu1 %vm240_vm1, %v205_v49  ;;  %v2106_v45 = vld [vmem:[%s2863_s22 + $0x82] sm:$0xff]  ;;  %v2107_v48 = vld [vmem:[%s2863_s22 + $0x8a] sm:$0xff]  ;;  %v2172_v57 = vld [vmem:[%s2863_s22 + $0x34] sm:$0xff] }
  0x32   : > { %2390 = vmatprep.mubr.msk.bf16.mxu0 %vm240_vm1, %v2917_v51  ;;  %2518 = vmatprep.subr.msk.bf16.mxu1 %vm265_vm0, %v2160_v52  ;;  %v2170_v49 = vld [vmem:[%s2863_s22 + $0x24] sm:$0xff]  ;;  %v2171_v50 = vld [vmem:[%s2863_s22 + $0x2c] sm:$0xff]  ;;  %v2145_v52 = vld [vmem:[%s2863_s22 + $0x1c] sm:$0xff]  ;;  %v683_v54 = vpack.c.bf16 %v2107_v48, %v2106_v45 }
  0x33   : > { %2519 = vmatprep.subr.msk.bf16.mxu0 %vm265_vm0, %v2186_v53  ;;  %v851_v53 = vpack.c.bf16 %v2133_v47, %v2132_v46  ;;  %v1180_v55 = vpack.c.bf16 %v2171_v50, %v2170_v49  ;;  %v2173_v58 = vld [vmem:[%s2863_s22 + $0x3c] sm:$0xff]  ;;  %v2174_v60 = vld [vmem:[%s2863_s22 + $0x44] sm:$0xff]  ;;  %v2175_v61 = vld [vmem:[%s2863_s22 + $0x4c] sm:$0xff] }
  0x34   : > { %v1181_v59 = vpack.c.bf16 %v2173_v58, %v2172_v57  ;;  %v2177_v2 = vld [vmem:[%s2863_s22 + $0x5c] sm:$0xff]  ;;  %v2178_v3 = vld [vmem:[%s2863_s22 + $0x64] sm:$0xff]  ;;  %v2179_v4 = vld [vmem:[%s2863_s22 + $0x6c] sm:$0xff] }
  0x35   : > { %v1184_v6 = vpack.c.bf16 %v2179_v4, %v2178_v3  ;;  %v2180_v7 = vld [vmem:[%s2863_s22 + $0x74] sm:$0xff]  ;;  %v2181_v8 = vld [vmem:[%s2863_s22 + $0x7c] sm:$0xff]  ;;  %v2182_v9 = vld [vmem:[%s2863_s22 + $0x84] sm:$0xff] }
  0x36   : > { %v2185_v14 = vld [vmem:[%s2863_s22 + $0x9c] sm:$0xff]  ;;  %v2222_v15 = vld [vmem:[%s2863_s22 + $0x26] sm:$0xff]  ;;  %v2223_v16 = vld [vmem:[%s2863_s22 + $0x2e] sm:$0xff] }
  0x37   : > { %2391 = vmatmul.mubr.msk.bf16.gmra.mxu0 %vm240_vm1, %v511_v62  ;;  %v2196_v17 = vld [vmem:[%s2863_s22 + $0x25] sm:$0xff]  ;;  %v2197_v18 = vld [vmem:[%s2863_s22 + $0x2d] sm:$0xff]  ;;  %v2224_v23 = vld [vmem:[%s2863_s22 + $0x36] sm:$0xff] }
  0x38   : > { %2373 = vmatmul.mubr.msk.bf16.gmra.mxu1 %vm240_vm1, %v206_v63  ;;  %2394 = vmatprep.mubr.msk.bf16.mxu0 %vm240_vm1, %v512_v0  ;;  %v1383_v63 = vsel %vm265_vm0, %v2212_v31, 0  ;;  %v2225_v24 = vld [vmem:[%s2863_s22 + $0x3e] sm:$0xff]  ;;  %v2226_v26 = vld [vmem:[%s2863_s22 + $0x46] sm:$0xff]  ;;  %v2227_v27 = vld [vmem:[%s2863_s22 + $0x4e] sm:$0xff] }
  0x39   : > { %2376 = vmatprep.mubr.msk.bf16.mxu1 %vm240_vm1, %v207_v1  ;;  %v2176_v1 = vld [vmem:[%s2863_s22 + $0x54] sm:$0xff]  ;;  %v1518_v32 = vpack.c.bf16 %v2227_v27, %v2226_v26  ;;  %v2229_v36 = vld [vmem:[%s2863_s22 + $0x5e] sm:$0xff]  ;;  %v2234_v50 = vld [vmem:[%s2863_s22 + $0x86] sm:$0xff] }
  0x3a   : > { %v1183_v5 = vpack.c.bf16 %v2177_v2, %v2176_v1  ;;  %v2228_v35 = vld [vmem:[%s2863_s22 + $0x56] sm:$0xff]  ;;  %v2231_v39 = vld [vmem:[%s2863_s22 + $0x6e] sm:$0xff]  ;;  %v2204_v40 = vld [vmem:[%s2863_s22 + $0x65] sm:$0xff] }
  0x3b   : > { %v2206_v46 = vld [vmem:[%s2863_s22 + $0x75] sm:$0xff]  ;;  %v2233_v48 = vld [vmem:[%s2863_s22 + $0x7e] sm:$0xff] }
  0x3c   : > { %v2232_v47 = vld [vmem:[%s2863_s22 + $0x76] sm:$0xff] }
  0x3d   : > { %v2207_v49 = vld [vmem:[%s2863_s22 + $0x7d] sm:$0xff] }
  0x3e   : > { %v2236_v58 = vld [vmem:[%s2863_s22 + $0x96] sm:$0xff] }
  0x3f   : > { %2395 = vmatmul.mubr.msk.bf16.gmra.mxu0 %vm240_vm1, %v513_v10 }
  0x40   : > { %2377 = vmatmul.mubr.msk.bf16.gmra.mxu1 %vm240_vm1, %v208_v11  ;;  %2398 = vmatprep.mubr.msk.bf16.mxu0 %vm240_vm1, %v514_v12  ;;  %v1185_v11 = vpack.c.bf16 %v2181_v8, %v2180_v7 }
  0x41   : > { %2380 = vmatprep.mubr.msk.bf16.mxu1 %vm240_vm1, %v209_v13  ;;  %v2184_v13 = vld [vmem:[%s2863_s22 + $0x94] sm:$0xff] }
  0x42   : > { %v1187_v19 = vpack.c.bf16 %v2185_v14, %v2184_v13 }
  0x47   : > { %2399 = vmatmul.mubr.msk.bf16.gmra.mxu0 %vm240_vm1, %v515_v20 }
  0x48   : > { %2381 = vmatmul.mubr.msk.bf16.gmra.mxu1 %vm240_vm1, %v210_v21  ;;  %2422 = vmatprep.mubr.msk.bf16.mxu0 %vm240_vm1, %v844_v22  ;;  %v1348_v21 = vpack.c.bf16 %v2197_v18, %v2196_v17  ;;  %v2198_v22 = vld [vmem:[%s2863_s22 + $0x35] sm:$0xff] }
  0x49   : > { %2404 = vmatprep.mubr.msk.bf16.mxu1 %vm240_vm1, %v2911_v44  ;;  %v850_v44 = vpack.c.bf16 %v2131_v42, %v2130_v41  ;;  %v2205_v41 = vld [vmem:[%s2863_s22 + $0x6d] sm:$0xff]  ;;  %v1519_v42 = vpack.c.bf16 %v2229_v36, %v2228_v35 }
  0x4a   : > { %v1352_v45 = vpack.c.bf16 %v2205_v41, %v2204_v40 }
  0x4f   : > { %2423 = vmatmul.mubr.msk.bf16.vlgmr.msra.gmra.mxu0 %vm240_vm1, %v845_v25  ;;  %v2199_v25 = vld [vmem:[%s2863_s22 + $0x3d] sm:$0xff] }
  0x50   : > { %2405 = vmatmul.mubr.msk.bf16.vlgmr.msra.gmra.mxu1 %vm240_vm1, %v2917_v51  ;;  %2457 = vmatpush3.bf16.msra.mxu0 %v1215_v28  ;;  %v2144_v51 = vld [vmem:[%s2863_s22 + $0x14] sm:$0xff]  ;;  %v2200_v28 = vld [vmem:[%s2863_s22 + $0x45] sm:$0xff] }
  0x51   : > { %2439 = vmatpush3.bf16.msra.mxu1 %v1047_v29  ;;  %2408 = vmatprep.mubr.msk.bf16.mxu1 %vm240_vm1, %v511_v62  ;;  %v1012_v56 = vpack.c.bf16 %v2145_v52, %v2144_v51  ;;  %v1551_v62 = vsel %vm265_vm0, %v2238_v34, 0  ;;  %v2201_v29 = vld [vmem:[%s2863_s22 + $0x4d] sm:$0xff]  ;;  %v2208_v52 = vld [vmem:[%s2863_s22 + $0x85] sm:$0xff] }
  0x52   : > { %2426 = vmatprep.mubr.msk.bf16.mxu0 %vm240_vm1, %v846_v30  ;;  %2520 = vmatprep.subr.msk.bf16.mxu1 %vm265_vm0, %v2212_v31  ;;  %v1517_v30 = vpack.c.bf16 %v2225_v24, %v2224_v23  ;;  %v1349_v31 = vpack.c.bf16 %v2199_v25, %v2198_v22  ;;  %v1350_v33 = vpack.c.bf16 %v2201_v29, %v2200_v28  ;;  %v2235_v51 = vld [vmem:[%s2863_s22 + $0x8e] sm:$0xff] }
  0x53   : > { %2521 = vmatprep.subr.msk.bf16.mxu0 %vm265_vm0, %v2238_v34  ;;  %v2202_v34 = vld [vmem:[%s2863_s22 + $0x55] sm:$0xff] }
  0x57   : > { %2427 = vmatmul.mubr.msk.bf16.gmra.mxu0 %vm240_vm1, %v847_v37  ;;  %v2203_v37 = vld [vmem:[%s2863_s22 + $0x5d] sm:$0xff] }
  0x58   : > { %2409 = vmatmul.mubr.msk.bf16.gmra.mxu1 %vm240_vm1, %v512_v0  ;;  %2430 = vmatprep.mubr.msk.bf16.mxu0 %vm240_vm1, %v848_v38  ;;  %v1182_v0 = vpack.c.bf16 %v2175_v61, %v2174_v60  ;;  %v2230_v38 = vld [vmem:[%s2863_s22 + $0x66] sm:$0xff]  ;;  %v2210_v60 = vld [vmem:[%s2863_s22 + $0x95] sm:$0xff]  ;;  %v2211_v61 = vld [vmem:[%s2863_s22 + $0x9d] sm:$0xff] }
  0x59   : > { %2412 = vmatprep.mubr.msk.bf16.mxu1 %vm240_vm1, %v513_v10  ;;  %v2183_v10 = vld [vmem:[%s2863_s22 + $0x8c] sm:$0xff] }
  0x5f   : > { %2431 = vmatmul.mubr.msk.bf16.gmra.mxu0 %vm240_vm1, %v849_v43  ;;  %v1351_v43 = vpack.c.bf16 %v2203_v37, %v2202_v34 }
  0x60   : > { %2413 = vmatmul.mubr.msk.bf16.gmra.mxu1 %vm240_vm1, %v514_v12  ;;  %2434 = vmatprep.mubr.msk.bf16.mxu0 %vm240_vm1, %v850_v44  ;;  %v1186_v12 = vpack.c.bf16 %v2183_v10, %v2182_v9  ;;  %v1520_v44 = vpack.c.bf16 %v2231_v39, %v2230_v38 }
  0x61   : > { %2416 = vmatprep.mubr.msk.bf16.mxu1 %vm240_vm1, %v515_v20  ;;  %v1516_v20 = vpack.c.bf16 %v2223_v16, %v2222_v15 }
  0x67   : > { %2435 = vmatmul.mubr.msk.bf16.gmra.mxu0 %vm240_vm1, %v851_v53  ;;  %v2209_v53 = vld [vmem:[%s2863_s22 + $0x8d] sm:$0xff] }
  0x68   : > { %2417 = vmatmul.mubr.msk.bf16.gmra.mxu1 %vm240_vm1, %v683_v54  ;;  %2458 = vmatprep.mubr.msk.bf16.mxu0 %vm240_vm1, %v1180_v55  ;;  %v1521_v54 = vpack.c.bf16 %v2233_v48, %v2232_v47  ;;  %v1354_v57 = vpack.c.bf16 %v2209_v53, %v2208_v52 }
  0x69   : > { %2440 = vmatprep.mubr.msk.bf16.mxu1 %vm240_vm1, %v1012_v56  ;;  %v1522_v56 = vpack.c.bf16 %v2235_v51, %v2234_v50 }
  0x6f   : > { %2459 = vmatmul.mubr.msk.bf16.vlgmr.msra.gmra.mxu0 %vm240_vm1, %v1181_v59 }
  0x70   : > { %2441 = vmatmul.mubr.msk.bf16.vlgmr.msra.gmra.mxu1 %vm240_vm1, %v1180_v55  ;;  %2493 = vmatpush3.bf16.msra.mxu0 %v1551_v62  ;;  %v1353_v55 = vpack.c.bf16 %v2207_v49, %v2206_v46 }
  0x71   : > { %2475 = vmatpush3.bf16.msra.mxu1 %v1383_v63  ;;  %2444 = vmatprep.mubr.msk.bf16.mxu1 %vm240_vm1, %v1181_v59  ;;  %v2237_v59 = vld [vmem:[%s2863_s22 + $0x9e] sm:$0xff]  ;;  %v1355_v63 = vpack.c.bf16 %v2211_v61, %v2210_v60  ;;  %s3252_s22 = scalar_lea.vmem [#allocation2], %s2028_s11  }
  0x72   : > { %2462 = vmatprep.mubr.msk.bf16.mxu0 %vm240_vm1, %v1182_v0  ;;  %v1523_v62 = vpack.c.bf16 %v2237_v59, %v2236_v58 }
  0x77   : > { %2463 = vmatmul.mubr.msk.bf16.gmra.mxu0 %vm240_vm1, %v1183_v5 }
  0x78   : > { %2445 = vmatmul.mubr.msk.bf16.gmra.mxu1 %vm240_vm1, %v1182_v0  ;;  %2466 = vmatprep.mubr.msk.bf16.mxu0 %vm240_vm1, %v1184_v6 }
  0x79   : > { %2448 = vmatprep.mubr.msk.bf16.mxu1 %vm240_vm1, %v1183_v5 }
  0x7f   : > { %2467 = vmatmul.mubr.msk.bf16.gmra.mxu0 %vm240_vm1, %v1185_v11 }
  0x80   : > { %2449 = vmatmul.mubr.msk.bf16.gmra.mxu1 %vm240_vm1, %v1184_v6  ;;  %2470 = vmatprep.mubr.msk.bf16.mxu0 %vm240_vm1, %v1186_v12 }
  0x81   : > { %2452 = vmatprep.mubr.msk.bf16.mxu1 %vm240_vm1, %v1185_v11 }
  0x87   : > { %2471 = vmatmul.mubr.msk.bf16.gmra.mxu0 %vm240_vm1, %v1187_v19 }
  0x88   : > { %2453 = vmatmul.mubr.msk.bf16.gmra.mxu1 %vm240_vm1, %v1186_v12  ;;  %2494 = vmatprep.mubr.msk.bf16.mxu0 %vm240_vm1, %v1516_v20 }
  0x89   : > { %2476 = vmatprep.mubr.msk.bf16.mxu1 %vm240_vm1, %v1348_v21 }
  0x8f   : > { %2495 = vmatmul.mubr.msk.bf16.vlgmr.msra.gmra.mxu0 %vm240_vm1, %v1517_v30 }
  0x90   : > { %2477 = vmatmul.mubr.msk.bf16.vlgmr.msra.gmra.mxu1 %vm240_vm1, %v1349_v31  ;;  %2498 = vmatprep.mubr.msk.bf16.mxu0 %vm240_vm1, %v1518_v32 }
  0x91   : > { %2480 = vmatprep.mubr.msk.bf16.mxu1 %vm240_vm1, %v1350_v33 }
  0x97   : > { %2499 = vmatmul.mubr.msk.bf16.gmra.mxu0 %vm240_vm1, %v1519_v42 }
  0x98   : > { %2481 = vmatmul.mubr.msk.bf16.gmra.mxu1 %vm240_vm1, %v1351_v43  ;;  %2502 = vmatprep.mubr.msk.bf16.mxu0 %vm240_vm1, %v1520_v44 }
  0x99   : > { %2484 = vmatprep.mubr.msk.bf16.mxu1 %vm240_vm1, %v1352_v45 }
  0x9f   : > { %2503 = vmatmul.mubr.msk.bf16.gmra.mxu0 %vm240_vm1, %v1521_v54 }
  0xa0   : > { %2485 = vmatmul.mubr.msk.bf16.gmra.mxu1 %vm240_vm1, %v1353_v55  ;;  %2506 = vmatprep.mubr.msk.bf16.mxu0 %vm240_vm1, %v1522_v56 }
  0xa1   : > { %2488 = vmatprep.mubr.msk.bf16.mxu1 %vm240_vm1, %v1354_v57 }
  0xa7   : > { %2507 = vmatmul.mubr.msk.bf16.gmra.mxu0 %vm240_vm1, %v1523_v62 }
  0xa8   : > { %2489 = vmatmul.mubr.msk.bf16.gmra.mxu1 %vm240_vm1, %v1355_v63 }
  0xdf   : > { %v2352_v0 = vpop.f32.mrf.mxu0 }
  0xe0   : > { %v2360_v1 = vpop.f32.mrf.mxu1 }
  0xe1   : > { %v303_v2 = vpop.f32.mrf.mxu0 }
  0xe2   : > { %v335_v3 = vpop.f32.mrf.mxu1 }
  0xe3   : > { %v2353_v4 = vpop.f32.mrf.mxu0 }
  0xe4   : > { %v2361_v5 = vpop.f32.mrf.mxu1 }
  0xe5   : > { %v306_v6 = vpop.f32.mrf.mxu0 }
  0xe6   : > { %v338_v7 = vpop.f32.mrf.mxu1 }
  0xe7   : > { %v2356_v8 = vpop.f32.mrf.mxu0 }
  0xe8   : > { %v2364_v9 = vpop.f32.mrf.mxu1 }
  0xe9   : > { %v319_v10 = vpop.f32.mrf.mxu0 }
  0xea   : > { %v351_v11 = vpop.f32.mrf.mxu1 }
  0xeb   : > { %v2357_v12 = vpop.f32.mrf.mxu0 }
  0xec   : > { %v2365_v13 = vpop.f32.mrf.mxu1 }
  0xed   : > { %v322_v14 = vpop.f32.mrf.mxu0 }
  0xee   : > { %v3093_v15 = vpop.f32.mrf.mxu1 }
  0xef   : > { %v2388_v16 = vpop.f32.mrf.mxu0 }
  0xf0   : > { %v2370_v17 = vpop.f32.mrf.mxu1 }
  0xf1   : > { %v436_v18 = vadd.f32 %v2370_v17, %v2352_v0  ;;  %v579_v19 = vpop.f32.mrf.mxu0 }
  0xf2   : > { %v427_v20 = vpop.f32.mrf.mxu1 }
  0xf3   : > { %v3095_v21 = vadd.f32 %v2388_v16, %v436_v18  ;;  %v428_v22 = vadd.f32 %v427_v20, %v303_v2  ;;  %v2389_v23 = vpop.f32.mrf.mxu0 }
  0xf4   : > { %v2371_v24 = vpop.f32.mrf.mxu1 }
  0xf5   : > { %v3097_v25 = vadd.f32 %v579_v19, %v428_v22  ;;  %v439_v26 = vadd.f32 %v2371_v24, %v2353_v4  ;;  %v582_v27 = vpop.f32.mrf.mxu0 }
  0xf6   : > { %v430_v28 = vpop.f32.mrf.mxu1 }
  0xf7   : > { %v3099_v29 = vadd.f32 %v2389_v23, %v439_v26  ;;  %v431_v30 = vadd.f32 %v430_v28, %v306_v6  ;;  %v2392_v31 = vpop.f32.mrf.mxu0 }
  0xf8   : > { %v2374_v32 = vpop.f32.mrf.mxu1 }
  0xf9   : > { %v3101_v33 = vadd.f32 %v582_v27, %v431_v30  ;;  %v452_v34 = vadd.f32 %v2374_v32, %v2356_v8  ;;  %v595_v35 = vpop.f32.mrf.mxu0 }
  0xfa   : > { %v443_v36 = vpop.f32.mrf.mxu1 }
  0xfb   : > { %v3103_v37 = vadd.f32 %v2392_v31, %v452_v34  ;;  %v444_v38 = vadd.f32 %v443_v36, %v319_v10  ;;  %v2393_v39 = vpop.f32.mrf.mxu0 }
  0xfc   : > { %v2375_v40 = vpop.f32.mrf.mxu1 }
  0xfd   : > { %v3105_v41 = vadd.f32 %v595_v35, %v444_v38  ;;  %v455_v42 = vadd.f32 %v2375_v40, %v2357_v12  ;;  %v598_v43 = vpop.f32.mrf.mxu0 }
  0xfe   : > { %v446_v44 = vpop.f32.mrf.mxu1 }
  0xff   : > { %v3107_v45 = vadd.f32 %v2393_v39, %v455_v42  ;;  %v447_v46 = vadd.f32 %v446_v44, %v322_v14  ;;  %v2396_v47 = vpop.f32.mrf.mxu0 }
 0x100   : > { %v2378_v48 = vpop.f32.mrf.mxu1 }
 0x101   : > { %v3109_v49 = vadd.f32 %v598_v43, %v447_v46  ;;  %v468_v50 = vadd.f32 %v2378_v48, %v2360_v1  ;;  %v611_v51 = vpop.f32.mrf.mxu0 }
 0x102   : > { %v459_v52 = vpop.f32.mrf.mxu1 }
 0x103   : > { %v3111_v53 = vadd.f32 %v2396_v47, %v468_v50  ;;  %v460_v54 = vadd.f32 %v459_v52, %v335_v3  ;;  %v2397_v55 = vpop.f32.mrf.mxu0 }
 0x104   : > { %v2379_v56 = vpop.f32.mrf.mxu1 }
 0x105   : > { %v3113_v57 = vadd.f32 %v611_v51, %v460_v54  ;;  %v471_v58 = vadd.f32 %v2379_v56, %v2361_v5  ;;  %v614_v59 = vpop.f32.mrf.mxu0 }
 0x106   : > { %v462_v60 = vpop.f32.mrf.mxu1 }
 0x107   : > { %v3115_v61 = vadd.f32 %v2397_v55, %v471_v58  ;;  %v463_v62 = vadd.f32 %v462_v60, %v338_v7  ;;  %v2400_v63 = vpop.f32.mrf.mxu0 }
 0x108   : > { %v2382_v0 = vpop.f32.mrf.mxu1 }
 0x109   : > { %v3117_v2 = vadd.f32 %v614_v59, %v463_v62  ;;  %v484_v1 = vadd.f32 %v2382_v0, %v2364_v9  ;;  %v627_v4 = vpop.f32.mrf.mxu0 }
 0x10a   : > { %v475_v6 = vpop.f32.mrf.mxu1 }
 0x10b   : > { %v3119_v8 = vadd.f32 %v2400_v63, %v484_v1  ;;  %v476_v3 = vadd.f32 %v475_v6, %v351_v11  ;;  %v2401_v10 = vpop.f32.mrf.mxu0 }
 0x10c   : > { %v2383_v12 = vpop.f32.mrf.mxu1 }
 0x10d   : > { %v3121_v14 = vadd.f32 %v627_v4, %v476_v3  ;;  %v487_v5 = vadd.f32 %v2383_v12, %v2365_v13  ;;  %v630_v16 = vpop.f32.mrf.mxu0 }
 0x10e   : > { %v478_v17 = vpop.f32.mrf.mxu1 }
 0x10f   : > { %3441 = vst [vmem:[#allocation3_spill] sm:$0xff] %v3121_v14  ;;  %v3123_v18 = vadd.f32 %v2401_v10, %v487_v5  ;;  %v479_v7 = vadd.f32 %v478_v17, %v3093_v15  ;;  %v2424_v19 = vpop.f32.mrf.mxu0 }
 0x110   : > { %v2406_v20 = vpop.f32.mrf.mxu1 }
 0x111   : > { %3442 = vst [vmem:[#allocation4_spill] sm:$0xff] %v3123_v18  ;;  %v3126_v22 = vadd.f32 %v630_v16, %v479_v7  ;;  %v915_v9 = vpop.f32.mrf.mxu0  ;;  %v812_v18 = vadd.f32 %v2406_v20, %v3095_v21 }
 0x112   : > { %v747_v23 = vpop.f32.mrf.mxu1 }
 0x113   : > { %3443 = vst [vmem:[#allocation5_spill] sm:$0xff] %v3126_v22  ;;  %v3128_v24 = vpop.f32.mrf.mxu0  ;;  %v810_v14 = vadd.f32 %v747_v23, %v3097_v25 }
 0x114   : > { %v2407_v11 = vpop.f32.mrf.mxu1 }
 0x115   : > { %v3130_v26 = vpop.f32.mrf.mxu0 }
 0x116   : > { %v750_v27 = vpop.f32.mrf.mxu1 }
 0x117   : > { %v3132_v28 = vpop.f32.mrf.mxu0  ;;  %v811_v21 = vadd.f32 %v750_v27, %v3101_v33 }
 0x118   : > { %v2410_v13 = vpop.f32.mrf.mxu1 }
 0x119   : > { %v3134_v30 = vpop.f32.mrf.mxu0  ;;  %v816_v25 = vadd.f32 %v2410_v13, %v3103_v37 }
 0x11a   : > { %v763_v31 = vpop.f32.mrf.mxu1 }
 0x11b   : > { %v3136_v32 = vpop.f32.mrf.mxu0  ;;  %v984_v27 = vadd.f32 %v3132_v28, %v816_v25 }
 0x11c   : > { %v3138_v15 = vpop.f32.mrf.mxu1 }
 0x11d   : > { %v3140_v34 = vpop.f32.mrf.mxu0  ;;  %v817_v37 = vadd.f32 %v3138_v15, %v3107_v45 }
 0x11e   : > { %v3142_v35 = vpop.f32.mrf.mxu1 }
 0x11f   : > { %v3144_v36 = vpop.f32.mrf.mxu0 }
 0x120   : > { %v3146_v38 = vpop.f32.mrf.mxu1 }
 0x121   : > { %v3148_v39 = vpop.f32.mrf.mxu0 }
 0x122   : > { %v3150_v40 = vpop.f32.mrf.mxu1 }
 0x123   : > { %v3152_v42 = vpop.f32.mrf.mxu0 }
 0x124   : > { %v3154_v43 = vpop.f32.mrf.mxu1 }
 0x125   : > { %v3156_v44 = vpop.f32.mrf.mxu0 }
 0x126   : > { %3444 = vst [vmem:[#allocation6_spill] sm:$0xff] %v3156_v44  ;;  %v3158_v46 = vpop.f32.mrf.mxu1 }
 0x127   : > { %v3160_v47 = vpop.f32.mrf.mxu0 }
 0x128   : > { %3445 = vst [vmem:[#allocation7_spill] sm:$0xff] %v3160_v47  ;;  %v3162_v48 = vpop.f32.mrf.mxu1 }
 0x129   : > { %v3164_v50 = vpop.f32.mrf.mxu0 }
 0x12a   : > { %3446 = vst [vmem:[#allocation8_spill] sm:$0xff] %v3164_v50  ;;  %v3166_v51 = vpop.f32.mrf.mxu1 }
 0x12b   : > { %3447 = vst [vmem:[#allocation9_spill] sm:$0xff] %v3166_v51  ;;  %v3168_v52 = vpop.f32.mrf.mxu0 }
 0x12c   : > { %3448 = vst [vmem:[#allocation10_spill] sm:$0xff] %v3168_v52  ;;  %v3170_v54 = vpop.f32.mrf.mxu1 }
 0x12d   : > { %3449 = vst [vmem:[#allocation11_spill] sm:$0xff] %v3170_v54  ;;  %v3172_v55 = vpop.f32.mrf.mxu0 }
 0x12e   : > { %3450 = vst [vmem:[#allocation12_spill] sm:$0xff] %v3172_v55  ;;  %v3174_v56 = vpop.f32.mrf.mxu1 }
 0x12f   : > { %3451 = vst [vmem:[#allocation13_spill] sm:$0xff] %v3174_v56  ;;  %v2460_v58 = vpop.f32.mrf.mxu0 }
 0x130   : > { %v2442_v59 = vpop.f32.mrf.mxu1 }
 0x131   : > { %v1251_v60 = vpop.f32.mrf.mxu0 }
 0x132   : > { %v1083_v62 = vpop.f32.mrf.mxu1 }
 0x133   : > { %v2461_v63 = vpop.f32.mrf.mxu0 }
 0x134   : > { %v2443_v0 = vpop.f32.mrf.mxu1 }
 0x135   : > { %v3176_v1 = vpop.f32.mrf.mxu0 }
 0x136   : > { %v1086_v4 = vpop.f32.mrf.mxu1 }
 0x137   : > { %v3178_v6 = vpop.f32.mrf.mxu0 }
 0x138   : > { %v2446_v3 = vpop.f32.mrf.mxu1 }
 0x139   : > { %v3180_v10 = vpop.f32.mrf.mxu0 }
 0x13a   : > { %v1099_v12 = vpop.f32.mrf.mxu1 }
 0x13b   : > { %v3182_v5 = vpop.f32.mrf.mxu0 }
 0x13c   : > { %v3184_v16 = vpop.f32.mrf.mxu1 }
 0x13d   : > { %v3186_v17 = vpop.f32.mrf.mxu0 }
 0x13e   : > { %3452 = vst [vmem:[#allocation14_spill] sm:$0xff] %v3186_v17  ;;  %v3188_v7 = vpop.f32.mrf.mxu1  ;;  %v813_v17 = vadd.f32 %v2407_v11, %v3099_v29  ;;  %v814_v29 = vadd.f32 %v763_v31, %v3105_v41  ;;  %v815_v31 = vadd.f32 %v3142_v35, %v3109_v49 }
 0x13f   : > { %v3190_v55 = vpop.f32.mrf.mxu0 }
 0x140   : > { %3453 = vst [vmem:[#allocation15_spill] sm:$0xff] %v3190_v55  ;;  %v3192_v52 = vpop.f32.mrf.mxu1  ;;  %v982_v41 = vadd.f32 %v3134_v30, %v814_v29 }
 0x141   : > { %v3194_v56 = vpop.f32.mrf.mxu0 }
 0x142   : > { %3454 = vst [vmem:[#allocation16_spill] sm:$0xff] %v3194_v56  ;;  %v3196_v22 = vpop.f32.mrf.mxu1  ;;  %v980_v56 = vadd.f32 %v2424_v19, %v812_v18  ;;  %v1150_v30 = vadd.f32 %v1099_v12, %v982_v41 }
 0x143   : > { %3455 = vst [vmem:[#allocation17_spill] sm:$0xff] %v3196_v22  ;;  %v3198_v50 = vpop.f32.mrf.mxu0 }
 0x144   : > { %3456 = vst [vmem:[#allocation18_spill] sm:$0xff] %v3198_v50  ;;  %v3200_v54 = vpop.f32.mrf.mxu1  ;;  %v1148_v20 = vadd.f32 %v2442_v59, %v980_v56 }
 0x145   : > { %3457 = vst [vmem:[#allocation19_spill] sm:$0xff] %v3200_v54  ;;  %v3203_v47 = vpop.f32.mrf.mxu0  ;;  %v978_v54 = vadd.f32 %v915_v9, %v810_v14  ;;  %v979_v14 = vadd.f32 %v3130_v26, %v811_v21  ;;  %v1152_v26 = vadd.f32 %v2446_v3, %v984_v27  ;;  %v983_v21 = vadd.f32 %v3140_v34, %v815_v31 }
 0x146   : > { %3458 = vst [vmem:[#allocation20_spill] sm:$0xff] %v3203_v47  ;;  %v3205_v51 = vpop.f32.mrf.mxu1  ;;  %v1316_v33 = vadd.f32 %v2460_v58, %v1148_v20 }
 0x147   : > { %v3208_v44 = vpop.f32.mrf.mxu0  ;;  %v1320_v20 = vadd.f32 %v3178_v6, %v1152_v26  ;;  %v3463_v26 = vld [vmem:[#allocation6_spill] sm:$0xff] }
 0x148   : > { %3459 = vst [vmem:[#allocation21_spill] sm:$0xff] %v3208_v44  ;;  %v3210_v55 = vpop.f32.mrf.mxu1  ;;  %v981_v44 = vadd.f32 %v3128_v24, %v813_v17 }
 0x149   : > { %3460 = vst [vmem:[#allocation22_spill] sm:$0xff] %v3210_v55  ;;  %v3213_v22 = vpop.f32.mrf.mxu0  ;;  %v1146_v55 = vadd.f32 %v1083_v62, %v978_v54  ;;  %v1147_v54 = vadd.f32 %v1086_v4, %v979_v14  ;;  %v820_v62 = vadd.f32 %v3146_v38, %v3111_v53 }
 0x14a   : > { %v3215_v50 = vpop.f32.mrf.mxu1  ;;  %v1149_v9 = vadd.f32 %v2443_v0, %v981_v44  ;;  %v3240_v44 = vld [vmem:[%s3438_s2] ss:$0 sm:$0xff] }
 0x14b   : > { %v3218_v47 = vpop.f32.mrf.mxu0  ;;  %v1314_v24 = vadd.f32 %v1251_v60, %v1146_v55  ;;  %v985_v60 = vadd.f32 %v3136_v32, %v817_v37  ;;  %v1315_v49 = vadd.f32 %v3176_v1, %v1147_v54  ;;  %v988_v34 = vadd.f32 %v3144_v36, %v820_v62  ;;  %v3461_v54 = vld [vmem:[#allocation17_spill] sm:$0xff] }
 0x14c   : > { %v3221_v23 = vpop.f32.mrf.mxu1  ;;  %v1317_v58 = vadd.f32 %v2461_v63, %v1149_v9  ;;  %v818_v63 = vadd.f32 %v3150_v40, %v3113_v57  ;;  %v821_v57 = vadd.f32 %v3154_v43, %v3115_v61  ;;  %v1318_v40 = vadd.f32 %v3180_v10, %v1150_v30 }
 0x14d   : > { %v3224_v18 = vpop.f32.mrf.mxu0  ;;  %v1153_v25 = vadd.f32 %v3184_v16, %v985_v60  ;;  %v1151_v16 = vadd.f32 %v3188_v7, %v983_v21  ;;  %v819_v36 = vadd.f32 %v3158_v46, %v3117_v2  ;;  %v1156_v27 = vadd.f32 %v3192_v52, %v988_v34  ;;  %v3462_v46 = vld [vmem:[#allocation14_spill] sm:$0xff]  ;;  %v3472_v34 = vld [vmem:[#allocation8_spill] sm:$0xff] }
 0x14e   : > { %v3227_v19 = vpop.f32.mrf.mxu1 }
 0x14f   : > { %v2496_v11 = vpop.f32.mrf.mxu0  ;;  %v1321_v43 = vadd.f32 %v3182_v5, %v1153_v25  ;;  %v1319_v52 = vadd.f32 %v3462_v46, %v1151_v16  ;;  %v3479_v46 = vld [vmem:[#allocation12_spill] sm:$0xff] }
 0x150   : > { %v2478_v13 = vpop.f32.mrf.mxu1 }
 0x151   : > { %v1484_v56 = vadd.f32 %v2478_v13, %v1316_v33  ;;  %v1587_v59 = vpop.f32.mrf.mxu0 }
 0x152   : > { %v1419_v28 = vpop.f32.mrf.mxu1 }
 0x153   : > { %v1652_v45 = vadd.f32 %v2496_v11, %v1484_v56  ;;  %v1482_v15 = vadd.f32 %v1419_v28, %v1314_v24  ;;  %v2497_v55 = vpop.f32.mrf.mxu0  ;;  %v986_v11 = vadd.f32 %v3148_v39, %v818_v63  ;;  %v989_v24 = vadd.f32 %v3152_v42, %v821_v57  ;;  %v3471_v63 = vld [vmem:[#allocation16_spill] sm:$0xff] }
 0x154   : > { %v2479_v0 = vpop.f32.mrf.mxu1  ;;  %v824_v39 = vadd.f32 %v3162_v48, %v3119_v8  ;;  %v987_v28 = vadd.f32 %v3463_v26, %v819_v36  ;;  %v3467_v48 = vld [vmem:[#allocation19_spill] sm:$0xff] }
 0x155   : > { %v1675_v35 = vadd.f32 %v3240_v44, %v1652_v45  ;;  %v1650_v4 = vadd.f32 %v1587_v59, %v1482_v15  ;;  %v1485_v3 = vadd.f32 %v2479_v0, %v1317_v58  ;;  %v1590_v17 = vpop.f32.mrf.mxu0  ;;  %v1154_v56 = vadd.f32 %v3461_v54, %v986_v11  ;;  %v3464_v58 = vld [vmem:[#allocation3_spill] sm:$0xff]  ;;  %v3465_v45 = vld [vmem:[#allocation9_spill] sm:$0xff] }
 0x156   : > { %v1422_v32 = vpop.f32.mrf.mxu1  ;;  %v822_v42 = vadd.f32 %v3465_v45, %v3464_v58  ;;  %v3466_v15 = vld [vmem:[#allocation15_spill] sm:$0xff]  ;;  %v1157_v60 = vadd.f32 %v3467_v48, %v989_v24  ;;  %v1155_v25 = vadd.f32 %v3205_v51, %v987_v28 }
 0x157   : > { %1691 = vst [vmem:[%s3252_s22 + $0x10] sm:$0xff] %v1675_v35  ;;  %v1673_v53 = vadd.f32 %v3240_v44, %v1650_v4  ;;  %v1653_v38 = vadd.f32 %v2497_v55, %v1485_v3  ;;  %v1483_v1 = vadd.f32 %v1422_v32, %v1315_v49  ;;  %v2500_v12 = vpop.f32.mrf.mxu0  ;;  %v1324_v55 = vadd.f32 %v3466_v15, %v1156_v27  ;;  %v3468_v35 = vld [vmem:[#allocation7_spill] sm:$0xff]  ;;  %v3469_v3 = vld [vmem:[#allocation4_spill] sm:$0xff] }
 0x158   : > { %v2482_v6 = vpop.f32.mrf.mxu1  ;;  %v992_v4 = vadd.f32 %v3468_v35, %v824_v39  ;;  %v990_v57 = vadd.f32 %v3472_v34, %v822_v42 }
 0x159   : > { %1689 = vst [vmem:[%s3252_s22] sm:$0xff] %v1673_v53  ;;  %v1676_v29 = vadd.f32 %v3240_v44, %v1653_v38  ;;  %v1651_v14 = vadd.f32 %v1590_v17, %v1483_v1  ;;  %v1488_v33 = vadd.f32 %v2482_v6, %v1320_v20  ;;  %v1603_v9 = vpop.f32.mrf.mxu0  ;;  %v3470_v17 = vld [vmem:[#allocation11_spill] sm:$0xff]  ;;  %v1322_v20 = vadd.f32 %v3471_v63, %v1154_v56  ;;  %v3474_v6 = vld [vmem:[#allocation13_spill] sm:$0xff] }
 0x15a   : > { %v1435_v61 = vpop.f32.mrf.mxu1  ;;  %v825_v21 = vadd.f32 %v3470_v17, %v3469_v3 }
 0x15b   : > { %1692 = vst [vmem:[%s3252_s22 + $0x18] sm:$0xff] %v1676_v29  ;;  %v1674_v10 = vadd.f32 %v3240_v44, %v1651_v14  ;;  %v1656_v7 = vadd.f32 %v2500_v12, %v1488_v33  ;;  %v1486_v37 = vadd.f32 %v1435_v61, %v1318_v40  ;;  %v2501_v13 = vpop.f32.mrf.mxu0  ;;  %v3473_v40 = vld [vmem:[#allocation5_spill] sm:$0xff]  ;;  %v3475_v29 = vld [vmem:[#allocation22_spill] sm:$0xff] }
 0x15c   : > { %v2483_v2 = vpop.f32.mrf.mxu1  ;;  %v823_v16 = vadd.f32 %v3474_v6, %v3473_v40  ;;  %v1160_v14 = vadd.f32 %v3475_v29, %v992_v4 }
 0x15d   : > { %1690 = vst [vmem:[%s3252_s22 + $0x8] sm:$0xff] %v1674_v10  ;;  %v1679_v5 = vadd.f32 %v3240_v44, %v1656_v7  ;;  %v1654_v59 = vadd.f32 %v1603_v9, %v1486_v37  ;;  %v1489_v41 = vadd.f32 %v2483_v2, %v1321_v43  ;;  %v1606_v31 = vpop.f32.mrf.mxu0  ;;  %v3476_v9 = vld [vmem:[#allocation18_spill] sm:$0xff]  ;;  %v1158_v7 = vadd.f32 %v3215_v50, %v990_v57 }
 0x15e   : > { %v1438_v8 = vpop.f32.mrf.mxu1  ;;  %v1325_v11 = vadd.f32 %v3476_v9, %v1157_v60  ;;  %v3477_v43 = vld [vmem:[#allocation10_spill] sm:$0xff] }
 0x15f   : > { %1695 = vst [vmem:[%s3252_s22 + $0x30] sm:$0xff] %v1679_v5  ;;  %v1677_v62 = vadd.f32 %v3240_v44, %v1654_v59  ;;  %v1657_v30 = vadd.f32 %v2501_v13, %v1489_v41  ;;  %v1487_v0 = vadd.f32 %v1438_v8, %v1319_v52  ;;  %v2504_v49 = vpop.f32.mrf.mxu0  ;;  %v993_v10 = vadd.f32 %v3477_v43, %v825_v21  ;;  %v3478_v13 = vld [vmem:[#allocation20_spill] sm:$0xff]  ;;  %v3480_v5 = vld [vmem:[#allocation21_spill] sm:$0xff] }
 0x160   : > { %v2486_v32 = vpop.f32.mrf.mxu1  ;;  %v1323_v24 = vadd.f32 %v3478_v13, %v1155_v25  ;;  %v991_v52 = vadd.f32 %v3479_v46, %v823_v16  ;;  %v1328_v59 = vadd.f32 %v3480_v5, %v1160_v14  ;;  %v1326_v45 = vadd.f32 %v3213_v22, %v1158_v7 }
 0x161   : > { %1693 = vst [vmem:[%s3252_s22 + $0x20] sm:$0xff] %v1677_v62  ;;  %v1680_v53 = vadd.f32 %v3240_v44, %v1657_v30  ;;  %v1655_v38 = vadd.f32 %v1606_v31, %v1487_v0  ;;  %v1492_v1 = vadd.f32 %v2486_v32, %v1324_v55  ;;  %v1619_v12 = vpop.f32.mrf.mxu0  ;;  %v1161_v31 = vadd.f32 %v3221_v23, %v993_v10 }
 0x162   : > { %v1451_v33 = vpop.f32.mrf.mxu1  ;;  %v1159_v15 = vadd.f32 %v3227_v19, %v991_v52 }
 0x163   : > { %1696 = vst [vmem:[%s3252_s22 + $0x38] sm:$0xff] %v1680_v53  ;;  %v1678_v51 = vadd.f32 %v3240_v44, %v1655_v38  ;;  %v1660_v36 = vadd.f32 %v2504_v49, %v1492_v1  ;;  %v1490_v27 = vadd.f32 %v1451_v33, %v1322_v20  ;;  %v2505_v61 = vpop.f32.mrf.mxu0  ;;  %v1329_v62 = vadd.f32 %v3218_v47, %v1161_v31 }
 0x164   : > { %v2487_v37 = vpop.f32.mrf.mxu1  ;;  %v1327_v19 = vadd.f32 %v3224_v18, %v1159_v15 }
 0x165   : > { %1694 = vst [vmem:[%s3252_s22 + $0x28] sm:$0xff] %v1678_v51  ;;  %v1683_v39 = vadd.f32 %v3240_v44, %v1660_v36  ;;  %v1658_v54 = vadd.f32 %v1619_v12, %v1490_v27  ;;  %v1493_v56 = vadd.f32 %v2487_v37, %v1325_v11  ;;  %v1622_v2 = vpop.f32.mrf.mxu0 }
 0x166   : > { %v1454_v41 = vpop.f32.mrf.mxu1 }
 0x167   : > { %1699 = vst [vmem:[%s3252_s22 + $0x50] sm:$0xff] %v1683_v39  ;;  %v1681_v50 = vadd.f32 %v3240_v44, %v1658_v54  ;;  %v1661_v26 = vadd.f32 %v2505_v61, %v1493_v56  ;;  %v1491_v28 = vadd.f32 %v1454_v41, %v1323_v24  ;;  %v2508_v58 = vpop.f32.mrf.mxu0 }
 0x168   : > { %v2490_v42 = vpop.f32.mrf.mxu1 }
 0x169   : > { %1697 = vst [vmem:[%s3252_s22 + $0x40] sm:$0xff] %v1681_v50  ;;  %v1684_v55 = vadd.f32 %v3240_v44, %v1661_v26  ;;  %v1659_v8 = vadd.f32 %v1622_v2, %v1491_v28  ;;  %v1496_v48 = vadd.f32 %v2490_v42, %v1328_v59  ;;  %v1635_v23 = vpop.f32.mrf.mxu0 }
 0x16a   : > { %v1467_v60 = vpop.f32.mrf.mxu1 }
 0x16b   : > { %1700 = vst [vmem:[%s3252_s22 + $0x58] sm:$0xff] %v1684_v55  ;;  %v1682_v30 = vadd.f32 %v3240_v44, %v1659_v8  ;;  %v1664_v0 = vadd.f32 %v2508_v58, %v1496_v48  ;;  %v1494_v22 = vadd.f32 %v1467_v60, %v1326_v45  ;;  %v2509_v35 = vpop.f32.mrf.mxu0 }
 0x16c   : > { %v2491_v49 = vpop.f32.mrf.mxu1 }
 0x16d   : > { %1698 = vst [vmem:[%s3252_s22 + $0x48] sm:$0xff] %v1682_v30  ;;  %v1687_v4 = vadd.f32 %v3240_v44, %v1664_v0  ;;  %v1662_v3 = vadd.f32 %v1635_v23, %v1494_v22  ;;  %v1497_v17 = vadd.f32 %v2491_v49, %v1329_v62  ;;  %v1638_v32 = vpop.f32.mrf.mxu0 }
 0x16e   : > { %v1470_v21 = vpop.f32.mrf.mxu1 }
 0x16f   : > { %1703 = vst [vmem:[%s3252_s22 + $0x70] sm:$0xff] %v1687_v4  ;;  %v1685_v47 = vadd.f32 %v3240_v44, %v1662_v3  ;;  %v1665_v63 = vadd.f32 %v2509_v35, %v1497_v17  ;;  %v1495_v20 = vadd.f32 %v1470_v21, %v1327_v19 }
 0x171   : > { %1701 = vst [vmem:[%s3252_s22 + $0x60] sm:$0xff] %v1685_v47  ;;  %v1688_v25 = vadd.f32 %v3240_v44, %v1665_v63  ;;  %v1663_v53 = vadd.f32 %v1638_v32, %v1495_v20  ;;  %1711 = sbr.rel (!%p2830_p5) target bundleno = 415 (0x19f), region = 36 }
 0x173   : > { %1704 = vst [vmem:[%s3252_s22 + $0x78] sm:$0xff] %v1688_v25  ;;  %v1686_v18 = vadd.f32 %v3240_v44, %v1663_v53 }
 0x175   : > { %1702 = vst [vmem:[%s3252_s22 + $0x68] sm:$0xff] %v1686_v18 }
 0x176   : > { %s3497_s26 = smov (!%p1714_p10, %s1713_s26), 16 }
 0x177   : > { %s2250_s6 = sshll.u32 %s3497_s26, 7 }
 0x178   : > { %p2253_p11 = scmp.eq.s32.totalorder %s2250_s6, 0 }
 0x179   : > { %s3338_s23 = sshrl.u32 (!%p2253_p11), %s3497_s26, 4 }
 0x17a   : > { %1724 = sbr.rel (%p2253_p11) target bundleno = 415 (0x19f), region = 40  ;;  %p2254_p12 = scmp.le.s32.totalorder (!%p2253_p11), %s3338_s23, 0 }
 0x17f   : > { %1968 = sbr.rel (%p2254_p12) target bundleno = 398 (0x18e), region = 133  ;;  %s3481_s14 = smov (!%p2254_p12), %s3334_s5 }
 0x180   : > { %s3482_s15 = smov (!%p2254_p12), %s3252_s22  ;;  %s3347_s7 = smov (!%p2254_p12), 0  }
 0x181   : > { %s3349_s8 = smov (!%p2254_p12), 0  }
 0x184 LB: >> { %v1817_v44 = vld [vmem:[%s2738_s15] sm:$0xff]  ;;  %v1819_v38 = vld [vmem:[%s2738_s15 + $0x8] sm:$0xff]  ;;  %v1821_v1 = vld [vmem:[%s2738_s15 + $0x10] sm:$0xff]  ;;  %s1849_s9 = sadd.s32 1, %s2742_s7  ;;  %s1811_s8 = sadd.s32 1, %s2746_s8   ;;  %s2746_s8 = sphi %s3349_s8, %s1811_s8   ;;  %s2742_s7 = sphi %s3347_s7, %s3483_s7   ;;  %s2738_s15 = sphi %s3482_s15, %s1854_s15   ;;  %s2734_s14 = sphi %s3481_s14, %s1855_s14  }
 0x185   : >> { %1818 = vst [vmem:[%s2734_s14] sm:$0xff] %v1817_v44  ;;  %1820 = vst [vmem:[%s2734_s14 + $0x8] sm:$0xff] %v1819_v38  ;;  %v1823_v12 = vld [vmem:[%s2738_s15 + $0x18] sm:$0xff]  ;;  %v1825_v34 = vld [vmem:[%s2738_s15 + $0x20] sm:$0xff]  ;;  %p1850_p13 = scmp.ge.s32.totalorder %s1849_s9, %s3338_s23  ;;  %p1810_p0 = scmp.ge.s32.totalorder %s1811_s8, %s3338_s23 }
 0x186   : >> { %1822 = vst [vmem:[%s2734_s14 + $0x10] sm:$0xff] %v1821_v1  ;;  %v1827_v57 = vld [vmem:[%s2738_s15 + $0x28] sm:$0xff]  ;;  %1824 = vst [vmem:[%s2734_s14 + $0x18] sm:$0xff] %v1823_v12  ;;  %v1829_v40 = vld [vmem:[%s2738_s15 + $0x30] sm:$0xff] }
 0x187   : >> { %1826 = vst [vmem:[%s2734_s14 + $0x20] sm:$0xff] %v1825_v34  ;;  %1828 = vst [vmem:[%s2734_s14 + $0x28] sm:$0xff] %v1827_v57  ;;  %v1831_v6 = vld [vmem:[%s2738_s15 + $0x38] sm:$0xff]  ;;  %v1833_v16 = vld [vmem:[%s2738_s15 + $0x40] sm:$0xff]  ;;  %s3499_s9 = smov (%p1850_p13, %s1849_s9), 0 }
 0x188   : >> { %1830 = vst [vmem:[%s2734_s14 + $0x30] sm:$0xff] %v1829_v40  ;;  %1832 = vst [vmem:[%s2734_s14 + $0x38] sm:$0xff] %v1831_v6  ;;  %v1835_v29 = vld [vmem:[%s2738_s15 + $0x48] sm:$0xff]  ;;  %v1837_v14 = vld [vmem:[%s2738_s15 + $0x50] sm:$0xff]  ;;  %s2255_s10 = sshll.u32 %s3499_s9, 7  ;;  %s3483_s7 = smov %s3499_s9 }
 0x189   : >> { %1834 = vst [vmem:[%s2734_s14 + $0x40] sm:$0xff] %v1833_v16  ;;  %v1839_v33 = vld [vmem:[%s2738_s15 + $0x58] sm:$0xff]  ;;  %1836 = vst [vmem:[%s2734_s14 + $0x48] sm:$0xff] %v1835_v29  ;;  %v1841_v9 = vld [vmem:[%s2738_s15 + $0x60] sm:$0xff]  ;;  %1813 = sbr.rel (!%p1810_p0) target bundleno = 388 (0x184), region = 139 }
 0x18a   : >> { %1838 = vst [vmem:[%s2734_s14 + $0x50] sm:$0xff] %v1837_v14  ;;  %1840 = vst [vmem:[%s2734_s14 + $0x58] sm:$0xff] %v1839_v33  ;;  %v1843_v11 = vld [vmem:[%s2738_s15 + $0x68] sm:$0xff]  ;;  %v1845_v51 = vld [vmem:[%s2738_s15 + $0x70] sm:$0xff] }
 0x18b   : >> { %1842 = vst [vmem:[%s2734_s14 + $0x60] sm:$0xff] %v1841_v9  ;;  %1844 = vst [vmem:[%s2734_s14 + $0x68] sm:$0xff] %v1843_v11  ;;  %v1847_v36 = vld [vmem:[%s2738_s15 + $0x78] sm:$0xff]  ;;  %s1854_s15 = scalar_lea.vmem %s3252_s22, %s2255_s10 [#allocation2]  }
 0x18c   : >> { %1846 = vst [vmem:[%s2734_s14 + $0x70] sm:$0xff] %v1845_v51  ;;  %1848 = vst [vmem:[%s2734_s14 + $0x78] sm:$0xff] %v1847_v36  ;;  %s1855_s14 = scalar_lea.vmem %s3334_s5, %s2255_s10  }
 0x18e PF: > { %s3407_s11 = sand.u32 15, %s3497_s26   ;;  %s2265_s12 = sshll.u32 %s3338_s23, 7 }
 0x18f   : > { %s1860_s21 = scalar_lea.vmem %s3252_s22, %s2265_s12 [#allocation2]   ;;  %s1862_s24 = scalar_lea.vmem %s3334_s5, %s2265_s12  }
 0x190   : > { %p2260_p1 = scmp.le.s32.totalorder %s3407_s11, 0 }
 0x191   : > { %s2748_s25 = smov (!%p2260_p1), %s1862_s24   ;;  %s2752_s28 = smov (!%p2260_p1), %s1860_s21  }
 0x192   : > { %1982 = sbr.rel (%p2260_p1) target bundleno = 415 (0x19f), region = 144  ;;  %s2756_s29 = smov (!%p2260_p1), 0  }
 0x193   : > { %s2760_s30 = smov (!%p2260_p1), 0  }
 0x197 LB: >> { %v1872_v27 = vld [vmem:[%s2754_s28] sm:$0xff]  ;;  %s1874_s26 = sadd.s32 1, %s2758_s29  ;;  %s1866_s30 = sadd.s32 1, %s2762_s30   ;;  %s2762_s30 = sphi %s2760_s30, %s1866_s30   ;;  %s2758_s29 = sphi %s2756_s29, %s2757_s29   ;;  %s2754_s28 = sphi %s2752_s28, %s1879_s28   ;;  %s2750_s25 = sphi %s2748_s25, %s1880_s25  }
 0x198   : >> { %1873 = vst [vmem:[%s2750_s25] sm:$0xff] %v1872_v27  ;;  %p1875_p2 = scmp.ge.s32.totalorder %s1874_s26, %s3407_s11  ;;  %p1865_p3 = scmp.ge.s32.totalorder %s1866_s30, %s3407_s11 }
 0x19a   : >> { %s3501_s26 = smov (%p1875_p2, %s1874_s26), 0  ;;  %1868 = sbr.rel (!%p1865_p3) target bundleno = 407 (0x197), region = 150 }
 0x19b   : >> { %s2261_s22 = sshll.u32 %s3501_s26, 3  ;;  %s2757_s29 = smov %s3501_s26  }
 0x19c   : >> { %s1879_s28 = scalar_lea.vmem %s1860_s21, %s2261_s22 [#allocation2]   ;;  %s1880_s25 = scalar_lea.vmem %s1862_s24, %s2261_s22  }
 0x19f PF: > { %s13_s18 = sadd.s32 1, %s2730_s18   ;;  %s3484_s12 = smov %s2710_s13 }
 0x1a0   : > { %p10_p4 = scmp.ge.s32.totalorder %s13_s18, 8   ;;  %s3485_s13 = smov %s2841_s27 }
 0x1a1   : > { %s3486_s14 = smov %s2722_s16  ;;  %s3487_s15 = smov %s2726_s17 }
 0x1a2   : > { %s3488_s16 = smov %s3491_s19  ;;  %s3489_s17 = smov %s3495_s20 }
 0x1a3   :  { %12 = sbr.rel (!%p10_p4) target bundleno = 4 (0x4), region = 161 }

// kernel: mul.0
= control target key start
LH: loop header
LB: loop body
LE: loop exit
PB: predicated region body
PF: predicated region fallthrough
CT: control target
= control target key end

     0   :  { %s804_s0 = inlined_call_operand.vmem [shape: f32[512,72], index: 0, kind: input, shape index: {}]   ;;  %s805_s1 = inlined_call_operand.vmem [shape: f32[512,72], index: 1, kind: input, shape index: {}]   ;;  %s806_s2 = inlined_call_operand.vmem [shape: f32[512,72], index: 2, kind: output, shape index: {}]  }
   0x1   :  { %v3_v0 = vld [vmem:[%s804_s0] sm:$0xff]  ;;  %v384_v27 = vld [vmem:[%s804_s0 + $0x8] sm:$0xff]  ;;  %v411_v54 = vld [vmem:[%s804_s0 + $0x10] sm:$0xff] }
   0x2   :  { %v4_v1 = vld [vmem:[%s805_s1] sm:$0xff]  ;;  %v385_v28 = vld [vmem:[%s805_s1 + $0x8] sm:$0xff]  ;;  %v412_v55 = vld [vmem:[%s805_s1 + $0x10] sm:$0xff] }
   0x3   :  { %v360_v2 = vld [vmem:[%s804_s0 + $0x20] sm:$0xff]  ;;  %v7_v3 = vmul.f32 %v4_v1, %v3_v0  ;;  %v387_v29 = vld [vmem:[%s804_s0 + $0x28] sm:$0xff]  ;;  %v96_v30 = vmul.f32 %v385_v28, %v384_v27  ;;  %v414_v56 = vld [vmem:[%s804_s0 + $0x30] sm:$0xff]  ;;  %v186_v57 = vmul.f32 %v412_v55, %v411_v54 }
   0x4   :  { %v361_v4 = vld [vmem:[%s805_s1 + $0x20] sm:$0xff]  ;;  %v388_v31 = vld [vmem:[%s805_s1 + $0x28] sm:$0xff]  ;;  %v415_v58 = vld [vmem:[%s805_s1 + $0x30] sm:$0xff] }
   0x5   :  { %v363_v5 = vld [vmem:[%s804_s0 + $0x40] sm:$0xff]  ;;  %v16_v7 = vmul.f32 %v361_v4, %v360_v2  ;;  %9 = vst [vmem:[%s806_s2] sm:$0xff] %v7_v3  ;;  %v390_v32 = vld [vmem:[%s804_s0 + $0x48] sm:$0xff]  ;;  %v106_v34 = vmul.f32 %v388_v31, %v387_v29  ;;  %386 = vst [vmem:[%s806_s2 + $0x8] sm:$0xff] %v96_v30  ;;  %v196_v61 = vmul.f32 %v415_v58, %v414_v56 }
   0x6   :  { %v364_v6 = vld [vmem:[%s805_s1 + $0x40] sm:$0xff]  ;;  %v391_v33 = vld [vmem:[%s805_s1 + $0x48] sm:$0xff]  ;;  %v417_v59 = vld [vmem:[%s804_s0 + $0x50] sm:$0xff]  ;;  %413 = vst [vmem:[%s806_s2 + $0x10] sm:$0xff] %v186_v57 }
   0x7   :  { %v26_v8 = vmul.f32 %v364_v6, %v363_v5  ;;  %v366_v9 = vld [vmem:[%s804_s0 + $0x60] sm:$0xff]  ;;  %362 = vst [vmem:[%s806_s2 + $0x20] sm:$0xff] %v16_v7  ;;  %v116_v35 = vmul.f32 %v391_v33, %v390_v32  ;;  %v393_v36 = vld [vmem:[%s804_s0 + $0x68] sm:$0xff]  ;;  %389 = vst [vmem:[%s806_s2 + $0x28] sm:$0xff] %v106_v34 }
   0x8   :  { %v367_v10 = vld [vmem:[%s805_s1 + $0x60] sm:$0xff]  ;;  %v394_v37 = vld [vmem:[%s805_s1 + $0x68] sm:$0xff]  ;;  %v418_v60 = vld [vmem:[%s805_s1 + $0x50] sm:$0xff]  ;;  %416 = vst [vmem:[%s806_s2 + $0x30] sm:$0xff] %v196_v61 }
   0x9   :  { %v369_v11 = vld [vmem:[%s804_s0 + $0x80] sm:$0xff]  ;;  %v36_v12 = vmul.f32 %v367_v10, %v366_v9  ;;  %365 = vst [vmem:[%s806_s2 + $0x40] sm:$0xff] %v26_v8  ;;  %v396_v38 = vld [vmem:[%s804_s0 + $0x88] sm:$0xff]  ;;  %v126_v39 = vmul.f32 %v394_v37, %v393_v36  ;;  %392 = vst [vmem:[%s806_s2 + $0x48] sm:$0xff] %v116_v35  ;;  %v206_v62 = vmul.f32 %v418_v60, %v417_v59 }
   0xa   :  { %v370_v13 = vld [vmem:[%s805_s1 + $0x80] sm:$0xff]  ;;  %v397_v40 = vld [vmem:[%s805_s1 + $0x88] sm:$0xff]  ;;  %v420_v63 = vld [vmem:[%s804_s0 + $0x70] sm:$0xff] }
   0xb   :  { %v372_v14 = vld [vmem:[%s804_s0 + $0xa0] sm:$0xff]  ;;  %v46_v16 = vmul.f32 %v370_v13, %v369_v11  ;;  %368 = vst [vmem:[%s806_s2 + $0x60] sm:$0xff] %v36_v12  ;;  %v399_v41 = vld [vmem:[%s804_s0 + $0xa8] sm:$0xff]  ;;  %v136_v43 = vmul.f32 %v397_v40, %v396_v38  ;;  %395 = vst [vmem:[%s806_s2 + $0x68] sm:$0xff] %v126_v39 }
   0xc   :  { %v373_v15 = vld [vmem:[%s805_s1 + $0xa0] sm:$0xff]  ;;  %v400_v42 = vld [vmem:[%s805_s1 + $0xa8] sm:$0xff]  ;;  %v421_v0 = vld [vmem:[%s805_s1 + $0x70] sm:$0xff]  ;;  %419 = vst [vmem:[%s806_s2 + $0x50] sm:$0xff] %v206_v62 }
   0xd   :  { %v56_v17 = vmul.f32 %v373_v15, %v372_v14  ;;  %v375_v18 = vld [vmem:[%s804_s0 + $0xc0] sm:$0xff]  ;;  %371 = vst [vmem:[%s806_s2 + $0x80] sm:$0xff] %v46_v16  ;;  %v146_v44 = vmul.f32 %v400_v42, %v399_v41  ;;  %v402_v45 = vld [vmem:[%s804_s0 + $0xc8] sm:$0xff]  ;;  %398 = vst [vmem:[%s806_s2 + $0x88] sm:$0xff] %v136_v43  ;;  %v216_v2 = vmul.f32 %v421_v0, %v420_v63 }
   0xe   :  { %v376_v19 = vld [vmem:[%s805_s1 + $0xc0] sm:$0xff]  ;;  %v403_v46 = vld [vmem:[%s805_s1 + $0xc8] sm:$0xff]  ;;  %v423_v1 = vld [vmem:[%s804_s0 + $0x90] sm:$0xff] }
   0xf   :  { %v378_v20 = vld [vmem:[%s804_s0 + $0xe0] sm:$0xff]  ;;  %v66_v21 = vmul.f32 %v376_v19, %v375_v18  ;;  %374 = vst [vmem:[%s806_s2 + $0xa0] sm:$0xff] %v56_v17  ;;  %v405_v47 = vld [vmem:[%s804_s0 + $0xe8] sm:$0xff]  ;;  %v156_v48 = vmul.f32 %v403_v46, %v402_v45  ;;  %401 = vst [vmem:[%s806_s2 + $0xa8] sm:$0xff] %v146_v44 }
  0x10   :  { %v379_v22 = vld [vmem:[%s805_s1 + $0xe0] sm:$0xff]  ;;  %v406_v49 = vld [vmem:[%s805_s1 + $0xe8] sm:$0xff]  ;;  %v424_v3 = vld [vmem:[%s805_s1 + $0x90] sm:$0xff]  ;;  %422 = vst [vmem:[%s806_s2 + $0x70] sm:$0xff] %v216_v2 }
  0x11   :  { %v381_v23 = vld [vmem:[%s804_s0 + $0x100] sm:$0xff]  ;;  %v76_v25 = vmul.f32 %v379_v22, %v378_v20  ;;  %377 = vst [vmem:[%s806_s2 + $0xc0] sm:$0xff] %v66_v21  ;;  %v408_v50 = vld [vmem:[%s804_s0 + $0x108] sm:$0xff]  ;;  %v166_v52 = vmul.f32 %v406_v49, %v405_v47  ;;  %404 = vst [vmem:[%s806_s2 + $0xc8] sm:$0xff] %v156_v48  ;;  %v226_v6 = vmul.f32 %v424_v3, %v423_v1 }
  0x12   :  { %v382_v24 = vld [vmem:[%s805_s1 + $0x100] sm:$0xff]  ;;  %v409_v51 = vld [vmem:[%s805_s1 + $0x108] sm:$0xff]  ;;  %v426_v4 = vld [vmem:[%s804_s0 + $0xb0] sm:$0xff] }
  0x13   :  { %v86_v26 = vmul.f32 %v382_v24, %v381_v23  ;;  %380 = vst [vmem:[%s806_s2 + $0xe0] sm:$0xff] %v76_v25  ;;  %v176_v53 = vmul.f32 %v409_v51, %v408_v50  ;;  %407 = vst [vmem:[%s806_s2 + $0xe8] sm:$0xff] %v166_v52  ;;  %v427_v5 = vld [vmem:[%s805_s1 + $0xb0] sm:$0xff]  ;;  %v438_v17 = vld [vmem:[%s804_s0 + $0x18] sm:$0xff] }
  0x14   :  { %v236_v7 = vmul.f32 %v427_v5, %v426_v4  ;;  %v429_v8 = vld [vmem:[%s804_s0 + $0xd0] sm:$0xff]  ;;  %425 = vst [vmem:[%s806_s2 + $0x90] sm:$0xff] %v226_v6  ;;  %v439_v18 = vld [vmem:[%s805_s1 + $0x18] sm:$0xff] }
  0x15   :  { %383 = vst [vmem:[%s806_s2 + $0x100] sm:$0xff] %v86_v26  ;;  %410 = vst [vmem:[%s806_s2 + $0x108] sm:$0xff] %v176_v53  ;;  %v430_v9 = vld [vmem:[%s805_s1 + $0xd0] sm:$0xff]  ;;  %v441_v19 = vld [vmem:[%s804_s0 + $0x38] sm:$0xff]  ;;  %v276_v20 = vmul.f32 %v439_v18, %v438_v17 }
  0x16   :  { %v432_v10 = vld [vmem:[%s804_s0 + $0xf0] sm:$0xff]  ;;  %v246_v11 = vmul.f32 %v430_v9, %v429_v8  ;;  %428 = vst [vmem:[%s806_s2 + $0xb0] sm:$0xff] %v236_v7  ;;  %v442_v21 = vld [vmem:[%s805_s1 + $0x38] sm:$0xff] }
  0x17   :  { %v433_v12 = vld [vmem:[%s805_s1 + $0xf0] sm:$0xff]  ;;  %v444_v22 = vld [vmem:[%s804_s0 + $0x58] sm:$0xff]  ;;  %v286_v24 = vmul.f32 %v442_v21, %v441_v19  ;;  %440 = vst [vmem:[%s806_s2 + $0x18] sm:$0xff] %v276_v20 }
  0x18   :  { %v435_v13 = vld [vmem:[%s804_s0 + $0x110] sm:$0xff]  ;;  %v256_v15 = vmul.f32 %v433_v12, %v432_v10  ;;  %431 = vst [vmem:[%s806_s2 + $0xd0] sm:$0xff] %v246_v11  ;;  %v445_v23 = vld [vmem:[%s805_s1 + $0x58] sm:$0xff] }
  0x19   :  { %v436_v14 = vld [vmem:[%s805_s1 + $0x110] sm:$0xff]  ;;  %v296_v25 = vmul.f32 %v445_v23, %v444_v22  ;;  %v447_v26 = vld [vmem:[%s804_s0 + $0x78] sm:$0xff]  ;;  %443 = vst [vmem:[%s806_s2 + $0x38] sm:$0xff] %v286_v24 }
  0x1a   :  { %v266_v16 = vmul.f32 %v436_v14, %v435_v13  ;;  %434 = vst [vmem:[%s806_s2 + $0xf0] sm:$0xff] %v256_v15  ;;  %v448_v27 = vld [vmem:[%s805_s1 + $0x78] sm:$0xff] }
  0x1b   :  { %v450_v28 = vld [vmem:[%s804_s0 + $0x98] sm:$0xff]  ;;  %v306_v29 = vmul.f32 %v448_v27, %v447_v26  ;;  %446 = vst [vmem:[%s806_s2 + $0x58] sm:$0xff] %v296_v25 }
  0x1c   :  { %437 = vst [vmem:[%s806_s2 + $0x110] sm:$0xff] %v266_v16  ;;  %v451_v30 = vld [vmem:[%s805_s1 + $0x98] sm:$0xff] }
  0x1d   :  { %v453_v31 = vld [vmem:[%s804_s0 + $0xb8] sm:$0xff]  ;;  %v316_v33 = vmul.f32 %v451_v30, %v450_v28  ;;  %449 = vst [vmem:[%s806_s2 + $0x78] sm:$0xff] %v306_v29 }
  0x1e   :  { %v454_v32 = vld [vmem:[%s805_s1 + $0xb8] sm:$0xff] }
  0x1f   :  { %v326_v34 = vmul.f32 %v454_v32, %v453_v31  ;;  %v456_v35 = vld [vmem:[%s804_s0 + $0xd8] sm:$0xff]  ;;  %452 = vst [vmem:[%s806_s2 + $0x98] sm:$0xff] %v316_v33 }
  0x20   :  { %v457_v36 = vld [vmem:[%s805_s1 + $0xd8] sm:$0xff] }
  0x21   :  { %v459_v37 = vld [vmem:[%s804_s0 + $0xf8] sm:$0xff]  ;;  %v336_v38 = vmul.f32 %v457_v36, %v456_v35  ;;  %455 = vst [vmem:[%s806_s2 + $0xb8] sm:$0xff] %v326_v34 }
  0x22   :  { %v460_v39 = vld [vmem:[%s805_s1 + $0xf8] sm:$0xff] }
  0x23   :  { %v462_v40 = vld [vmem:[%s804_s0 + $0x118] sm:$0xff]  ;;  %v346_v42 = vmul.f32 %v460_v39, %v459_v37  ;;  %458 = vst [vmem:[%s806_s2 + $0xd8] sm:$0xff] %v336_v38 }
  0x24   :  { %v463_v41 = vld [vmem:[%s805_s1 + $0x118] sm:$0xff] }
  0x25   :  { %v356_v43 = vmul.f32 %v463_v41, %v462_v40  ;;  %461 = vst [vmem:[%s806_s2 + $0xf8] sm:$0xff] %v346_v42 }
  0x27   :  { %464 = vst [vmem:[%s806_s2 + $0x118] sm:$0xff] %v356_v43 }

// kernel: deform_conv_with_off_forward.3
= control target key start
LH: loop header
LB: loop body
LE: loop exit
PB: predicated region body
PF: predicated region fallthrough
CT: control target
= control target key end

     0   :  { %s565_s9 = smov 0   ;;  %s627_s0 = inlined_call_operand.vmem [shape: bf16[512,72], index: 0, kind: input, shape index: {}]   ;;  %s628_s1 = inlined_call_operand.vmem [shape: bf16[72,128], index: 1, kind: input, shape index: {}]   ;;  %s629_s2 = inlined_call_operand.vmem [shape: f32[512,128], index: 2, kind: output, shape index: {}]  }
   0x1 LB: > { %s438_s10 = sadd.s32 4294967295, %s548_s9   ;;  %p442_p0 = scmp.ge.s32.totalorder %s548_s9, 1  ;;  %s548_s9 = sphi %s565_s9, %s12_s9  }
   0x2   : > { %p113_p1 = scmp.lt.s32.totalorder %s548_s9, 5 }
   0x4   : > { %p114_p2 = pnand %p442_p0, %p113_p1 }
   0x5   : > { %s443_s15 = sshll.u32 (!%p114_p2), %s438_s10, 4 }
   0x6   : > { %117 = sbr.rel (%p114_p2) target bundleno = 240 (0xf0), region = 28  ;;  %p136_p3 = scmp.lt.s32.totalorder (!%p114_p2), %s443_s15, 63 }
   0xb   : > { %v529_v0 = vld [vmem:[%s628_s1 + $0x20] ss:$0 sps:$4 sm:$0xff]   ;;  %vm265_vm0 = vcmask 1043456   ;;  %v530_v1 = vld [vmem:[%s628_s1 + $0x18] sm:$0xff]   ;;  %v531_v3 = vld [vmem:[%s628_s1 + $0x10] sm:$0xff]   ;;  %s631_s15 = smov (!%p136_p3, %s443_s15), 63 }
   0xc   : > { %519 = vmatprep.subr.msk.bf16.mxu0 %vm265_vm0, %v529_v0  ;;  %520 = vmatprep.subr.msk.bf16.mxu1 %vm265_vm0, %v529_v0  ;;  %v267_v2 = vsel %vm265_vm0, %v529_v0, 0  ;;  %v532_v4 = vld [vmem:[%s628_s1 + $0x8] sm:$0xff]   ;;  %s444_s20 = sshll.u32 %s631_s15, 2  ;;  %vm240_vm1 = vcmask 588800   ;;  %v533_v7 = vld [vmem:[%s628_s1] sm:$0xff]   ;;  %s446_s26 = sshll.u32 %s631_s15, 3 }
   0xd   : > { %484 = vmatpush3.bf16.msra.mxu0 %v267_v2  ;;  %514 = vmatpush3.bf16.msra.mxu1 %v267_v2  ;;  %s139_s23 = scalar_lea.vmem %s627_s0, %s444_s20  ;;  %s606_s29 = scalar_lea.vmem %s629_s2, %s446_s26 }
   0xe   : > { %485 = vmatprep.subr.bf16.mxu0 %v530_v1  ;;  %510 = vmatprep.subr.bf16.mxu1 %v530_v1  ;;  %v534_v5 = vld [vmem:[%s139_s23] sm:$0xff]   ;;  %v536_v8 = vld [vmem:[%s139_s23 + $0x8] sm:$0xff]   ;;  %v538_v10 = vld [vmem:[%s139_s23 + $0x10] sm:$0xff]  }
   0xf   : > { %v535_v6 = vld [vmem:[%s139_s23 + $0x20] sm:$0xff]   ;;  %493 = vmatprep.mubr.msk.bf16.mxu0 %vm240_vm1, %v534_v5  ;;  %v537_v9 = vld [vmem:[%s139_s23 + $0x28] sm:$0xff]   ;;  %v539_v11 = vld [vmem:[%s139_s23 + $0x30] sm:$0xff]  }
  0x10   : > { %501 = vmatprep.mubr.msk.bf16.mxu1 %vm240_vm1, %v535_v6  ;;  %v540_v12 = vld [vmem:[%s139_s23 + $0x18] sm:$0xff]  }
  0x11   : > { %486 = vmatpush3.bf16.msra.mxu0 %v530_v1  ;;  %515 = vmatpush3.bf16.msra.mxu1 %v530_v1  ;;  %v541_v13 = vld [vmem:[%s139_s23 + $0x38] sm:$0xff]  }
  0x12   : > { %487 = vmatprep.subr.bf16.mxu0 %v531_v3  ;;  %511 = vmatprep.subr.bf16.mxu1 %v531_v3 }
  0x15   : > { %488 = vmatpush3.bf16.msra.mxu0 %v531_v3  ;;  %516 = vmatpush3.bf16.msra.mxu1 %v531_v3 }
  0x16   : > { %489 = vmatprep.subr.bf16.mxu0 %v532_v4  ;;  %512 = vmatprep.subr.bf16.mxu1 %v532_v4 }
  0x19   : > { %490 = vmatpush3.bf16.msra.mxu0 %v532_v4  ;;  %517 = vmatpush3.bf16.msra.mxu1 %v532_v4 }
  0x1a   : > { %491 = vmatprep.subr.bf16.mxu0 %v533_v7  ;;  %513 = vmatprep.subr.bf16.mxu1 %v533_v7 }
  0x1d   : > { %492 = vmatpush3.bf16.msra.mxu0 %v533_v7  ;;  %518 = vmatpush3.bf16.msra.mxu1 %v533_v7 }
  0x20   : > { %494 = vmatmul.mubr.msk.bf16.vlgmr.msra.gmra.mxu0 %vm240_vm1, %v536_v8  ;;  %502 = vmatmul.mubr.msk.bf16.vlgmr.msra.gmra.mxu1 %vm240_vm1, %v537_v9 }
  0x21   : > { %497 = vmatprep.mubr.msk.bf16.mxu0 %vm240_vm1, %v538_v10  ;;  %505 = vmatprep.mubr.msk.bf16.mxu1 %vm240_vm1, %v539_v11 }
  0x28   : > { %498 = vmatmul.mubr.msk.bf16.gmra.mxu0 %vm240_vm1, %v540_v12  ;;  %506 = vmatmul.mubr.msk.bf16.gmra.mxu1 %vm240_vm1, %v541_v13 }
  0xe0   : > { %v495_v14 = vpop.f32.mrf.mxu0  ;;  %v503_v15 = vpop.f32.mrf.mxu1 }
  0xe1   : > { %368 = vst [vmem:[%s606_s29 + $0x10] sm:$0xff] %v495_v14  ;;  %376 = vst [vmem:[%s606_s29 + $0x50] sm:$0xff] %v503_v15 }
  0xe2   : > { %v303_v16 = vpop.f32.mrf.mxu0  ;;  %v335_v17 = vpop.f32.mrf.mxu1 }
  0xe3   : > { %366 = vst [vmem:[%s606_s29] sm:$0xff] %v303_v16  ;;  %374 = vst [vmem:[%s606_s29 + $0x40] sm:$0xff] %v335_v17 }
  0xe4   : > { %v496_v18 = vpop.f32.mrf.mxu0  ;;  %v504_v19 = vpop.f32.mrf.mxu1 }
  0xe5   : > { %369 = vst [vmem:[%s606_s29 + $0x18] sm:$0xff] %v496_v18  ;;  %377 = vst [vmem:[%s606_s29 + $0x58] sm:$0xff] %v504_v19 }
  0xe6   : > { %v306_v20 = vpop.f32.mrf.mxu0  ;;  %v338_v21 = vpop.f32.mrf.mxu1 }
  0xe7   : > { %367 = vst [vmem:[%s606_s29 + $0x8] sm:$0xff] %v306_v20  ;;  %375 = vst [vmem:[%s606_s29 + $0x48] sm:$0xff] %v338_v21 }
  0xe8   : > { %v499_v22 = vpop.f32.mrf.mxu0  ;;  %v507_v23 = vpop.f32.mrf.mxu1 }
  0xe9   : > { %372 = vst [vmem:[%s606_s29 + $0x30] sm:$0xff] %v499_v22  ;;  %380 = vst [vmem:[%s606_s29 + $0x70] sm:$0xff] %v507_v23 }
  0xea   : > { %v319_v24 = vpop.f32.mrf.mxu0  ;;  %v351_v25 = vpop.f32.mrf.mxu1 }
  0xeb   : > { %370 = vst [vmem:[%s606_s29 + $0x20] sm:$0xff] %v319_v24  ;;  %378 = vst [vmem:[%s606_s29 + $0x60] sm:$0xff] %v351_v25 }
  0xec   : > { %v500_v26 = vpop.f32.mrf.mxu0  ;;  %v508_v27 = vpop.f32.mrf.mxu1 }
  0xed   : > { %373 = vst [vmem:[%s606_s29 + $0x38] sm:$0xff] %v500_v26  ;;  %381 = vst [vmem:[%s606_s29 + $0x78] sm:$0xff] %v508_v27 }
  0xee   : > { %v322_v28 = vpop.f32.mrf.mxu0  ;;  %v354_v29 = vpop.f32.mrf.mxu1 }
  0xef   : > { %371 = vst [vmem:[%s606_s29 + $0x28] sm:$0xff] %v322_v28  ;;  %379 = vst [vmem:[%s606_s29 + $0x68] sm:$0xff] %v354_v29 }
  0xf0 PF: > { %s12_s9 = sadd.s32 1, %s548_s9  }
  0xf1   : > { %p9_p4 = scmp.ge.s32.totalorder %s12_s9, 6  }
  0xf3   :  { %11 = sbr.rel (!%p9_p4) target bundleno = 1 (0x1), region = 58 }

</bundles_post_ra>
